<compile_context>
chip_gen: v7x
topology: tpu7x:2x2x1
jax: 0.10.0
libtpu: 0.0.40
codegen_flags: <defaults>
</compile_context>

<pallas_src>
import functools

import jax
import jax.numpy as jnp
from jax.experimental import pallas as pl
from jax.experimental.pallas import tpu as pltpu

# Hyper-parameters (consistent with SimpleConvNet's defaults / forward).
IN_C = 2
OUT_C = 2
HIDDEN = 128
EMB_DIM = 8
KS = 3
N_BLKS = 3
NEG_SLOPE = 0.2
BN_EPS = 1e-5
N_EMB = 24

OUT_PAD = 128                            # lane-dense output slab width
PAD = max(8, 2 ** (N_BLKS - 1))          # halo >= max dilation, sublane-aligned

B = 2   # batch
T = 16  # sequence length


def _leaky(x):
    return jnp.where(x > 0, x, NEG_SLOPE * x)


# ---------------------------------------------------------------------------
# Fused Pallas kernel: MLP branch + fc_in + 3 dilated conv blocks + fc_out
# ---------------------------------------------------------------------------
def fused_forward_kernel(x_ref, e_ref, w1_ref, b1_ref, w2_ref, b2_ref,
                         winx_ref, wine_ref, bin_ref,
                         wblk_ref, bblk_ref, wout_ref, bout_ref,
                         o_ref, zbuf_ref, *, batch, seq_len):
    n_rows = batch * seq_len

    # hr embedding MLP: fc1_hr -> LeakyReLU -> fc2_hr
    e1 = _leaky(jnp.dot(e_ref[...], w1_ref[...],
                        preferred_element_type=jnp.float32) + b1_ref[...])
    e2 = jnp.dot(e1, w2_ref[...], preferred_element_type=jnp.float32) + b2_ref[...]

    # fc_in(concat([x, e2], -1)) == x @ Wx + e2 @ We + b  (weight split in glue)
    z = (jnp.dot(x_ref[...], winx_ref[...], preferred_element_type=jnp.float32)
         + jnp.dot(e2, wine_ref[...], preferred_element_type=jnp.float32)
         + bin_ref[...])                                   # (B*T, H)

    # In-VMEM same-padding: zero the whole (tiny) buffer once; all per-block
    # halos stay zero because only the interior is ever rewritten.
    zbuf_ref[...] = jnp.zeros_like(zbuf_ref)
    zbuf_ref[:, PAD:PAD + seq_len, :] = z.reshape(batch, seq_len, HIDDEN)

    # Dilated conv blocks: Conv1d(same pad) + BN(eval, folded into W/b) +
    # LeakyReLU(0.2).  Dropout == identity in eval mode.
    for blk in range(N_BLKS):
        d = 2 ** blk
        w = wblk_ref[blk]                                  # (KS, H, H), BN-folded
        b = bblk_ref[blk]                                  # (1, H),     BN-folded
        acc = jnp.zeros((n_rows, HIDDEN), jnp.float32)
        for k in range(KS):
            start = PAD - d + k * d                        # static, >= 0
            xs = zbuf_ref[:, start:start + seq_len, :].reshape(n_rows, HIDDEN)
            acc = acc + jnp.dot(xs, w[k], preferred_element_type=jnp.float32)
        y = _leaky(acc + b)
        zbuf_ref[:, PAD:PAD + seq_len, :] = y.reshape(batch, seq_len, HIDDEN)

    # fc_out into a lane-dense (B*T, 128) slab; sliced to OUT_C in the wrapper.
    zf = zbuf_ref[:, PAD:PAD + seq_len, :].reshape(n_rows, HIDDEN)
    o_ref[...] = (jnp.dot(zf, wout_ref[...], preferred_element_type=jnp.float32)
                  + bout_ref[...])


# ---------------------------------------------------------------------------
# One-time parameter packing / BN folding (keeps the per-call wrapper lean)
# ---------------------------------------------------------------------------
def pack_params(params):
    w_blocks, b_blocks = [], []
    for blk in params["blocks"]:
        s = blk["scale"]                                   # (1, H) per-out-channel
        # (conv(x; W) + b) * s + t  ==  conv(x; W*s) + (b*s + t)
        w_blocks.append(blk["w_taps"] * s[None, :, :])     # (KS, Cin, Cout)
        b_blocks.append(blk["bias"] * s + blk["shift"])    # (1, H)

    return {
        "emb": params["emb"],
        "w1": params["w1"], "b1": params["b1"],
        "w2": params["w2"], "b2": params["b2"],
        "win_x": params["win_x"], "win_e": params["win_e"], "b_in": params["b_in"],
        "w_blk": jnp.stack(w_blocks),                      # (N_BLKS, KS, H, H)
        "b_blk": jnp.stack(b_blocks),                      # (N_BLKS, 1, H)
        # Lane-dense fc_out weights (zero-padded to 128 output lanes).
        "w_out": jnp.zeros((HIDDEN, OUT_PAD), jnp.float32).at[:, :OUT_C].set(
            params["w_out"]),
        "b_out": jnp.zeros((1, OUT_PAD), jnp.float32).at[:, :OUT_C].set(
            params["b_out"]),
    }


# ---------------------------------------------------------------------------
# Wrapper (glue: embedding gather, output slice)
# ---------------------------------------------------------------------------
def simple_conv_net_forward(x, h, packed):
    bsz, seq, _ = x.shape
    n_rows = bsz * seq

    # Embedding lookup (gather) stays in JAX glue.
    e = packed["emb"][h[:, :, 0]]                          # (B, T, E)
    x2d = x.reshape(n_rows, IN_C)
    e2d = e.reshape(n_rows, EMB_DIM)

    kern = functools.partial(fused_forward_kernel, batch=bsz, seq_len=seq)
    out_p = pl.pallas_call(
        kern,
        out_shape=jax.ShapeDtypeStruct((n_rows, OUT_PAD), jnp.float32),
        in_specs=[pl.BlockSpec(memory_space=pltpu.MemorySpace.VMEM)] * 13,
        out_specs=pl.BlockSpec(memory_space=pltpu.MemorySpace.VMEM),
        scratch_shapes=[pltpu.VMEM((bsz, seq + 2 * PAD, HIDDEN), jnp.float32)],
    )(x2d, e2d, packed["w1"], packed["b1"], packed["w2"], packed["b2"],
      packed["win_x"], packed["win_e"], packed["b_in"],
      packed["w_blk"], packed["b_blk"], packed["w_out"], packed["b_out"])

    return out_p[:, :OUT_C].reshape(bsz, seq, OUT_C)


# ---------------------------------------------------------------------------
# Deterministic parameter init + pure-JAX reference
# ---------------------------------------------------------------------------
def init_params(key):
    keys = iter(jax.random.split(key, 32))

    def rnd(shape, scale=0.1):
        return scale * jax.random.normal(next(keys), shape, dtype=jnp.float32)

    params = {
        "emb": rnd((N_EMB, EMB_DIM)),
        "w1": rnd((EMB_DIM, EMB_DIM)), "b1": rnd((1, EMB_DIM)),
        "w2": rnd((EMB_DIM, EMB_DIM)), "b2": rnd((1, EMB_DIM)),
        "win_x": rnd((IN_C, HIDDEN)), "win_e": rnd((EMB_DIM, HIDDEN)),
        "b_in": rnd((1, HIDDEN)),
        "w_out": rnd((HIDDEN, OUT_C)), "b_out": rnd((1, OUT_C)),
        "blocks": [],
    }
    for i in range(N_BLKS):
        conv_w = rnd((KS, HIDDEN, HIDDEN))                 # (tap, Cin, Cout)
        conv_b = rnd((1, HIDDEN))
        gamma = 1.0 + rnd((1, HIDDEN))
        beta = rnd((1, HIDDEN))
        run_mean = rnd((1, HIDDEN))
        run_var = jnp.abs(rnd((1, HIDDEN))) + 1.0
        scale = gamma / jnp.sqrt(run_var + BN_EPS)
        shift = beta - run_mean * scale
        params["blocks"].append({"dilation": 2 ** i, "w_taps": conv_w,
                                 "bias": conv_b, "scale": scale, "shift": shift})
    return params


def reference_forward(x, h, params):
    with jax.default_matmul_precision("highest"):
        e = params["emb"][h[:, :, 0]]
        e = e @ params["w1"] + params["b1"][0]
        e = jnp.where(e > 0, e, NEG_SLOPE * e)
        e = e @ params["w2"] + params["b2"][0]
        win = jnp.concatenate([params["win_x"], params["win_e"]], axis=0)
        z = jnp.concatenate([x, e], axis=-1) @ win + params["b_in"][0]
        for blk in params["blocks"]:
            d = blk["dilation"]
            zp = jnp.pad(z, ((0, 0), (d, d), (0, 0)))
            acc = jnp.zeros_like(z) + blk["bias"][0]
            for k in range(KS):
                acc = acc + zp[:, k * d:k * d + z.shape[1], :] @ blk["w_taps"][k]
            y = acc * blk["scale"][0] + blk["shift"][0]
            z = jnp.where(y > 0, y, NEG_SLOPE * y)
        return z @ params["w_out"] + params["b_out"][0]


if __name__ == "__main__":
    key = jax.random.PRNGKey(0)
    kp, kx, kh = jax.random.split(key, 3)
    params = init_params(kp)
    packed = pack_params(params)

    x = jax.random.normal(kx, (B, T, IN_C), dtype=jnp.float32)
    h = jax.random.randint(kh, (B, T, 1), 0, N_EMB, dtype=jnp.int32)

    out = jax.block_until_ready(simple_conv_net_forward(x, h, packed))
    ref = reference_forward(x, h, params)

    assert out.shape == (B, T, OUT_C), out.shape
    assert jnp.allclose(out, ref, atol=2e-3, rtol=2e-3), \
        float(jnp.max(jnp.abs(out - ref)))
    print("KERNEL_OK")
</pallas_src>

<mosaic_0001>
module attributes {stable_mosaic.version = 11 : i64} {
  func.func @fused_forward_kernel(%arg0: memref<32x2xf32, #tpu.memory_space<vmem>>, %arg1: memref<32x8xf32, #tpu.memory_space<vmem>>, %arg2: memref<8x8xf32, #tpu.memory_space<vmem>>, %arg3: memref<1x8xf32, #tpu.memory_space<vmem>>, %arg4: memref<8x8xf32, #tpu.memory_space<vmem>>, %arg5: memref<1x8xf32, #tpu.memory_space<vmem>>, %arg6: memref<2x128xf32, #tpu.memory_space<vmem>>, %arg7: memref<8x128xf32, #tpu.memory_space<vmem>>, %arg8: memref<1x128xf32, #tpu.memory_space<vmem>>, %arg9: memref<3x3x128x128xf32, #tpu.memory_space<vmem>>, %arg10: memref<3x1x128xf32, #tpu.memory_space<vmem>>, %arg11: memref<128x128xf32, #tpu.memory_space<vmem>>, %arg12: memref<1x128xf32, #tpu.memory_space<vmem>>, %arg13: memref<32x128xf32, #tpu.memory_space<vmem>>, %arg14: memref<2x32x128xf32, #tpu.memory_space<vmem>>) attributes {dimension_semantics = [], scalar_prefetch = 0 : i64, scratch_operands = 1 : i64, tpu.core_type = #tpu.core_type<tc>} {
    %c0 = arith.constant 0 : index
    %c0_0 = arith.constant 0 : index
    %0 = vector.load %arg1[%c0, %c0_0] : memref<32x8xf32, #tpu.memory_space<vmem>>, vector<32x8xf32>
    %c0_1 = arith.constant 0 : index
    %c0_2 = arith.constant 0 : index
    %1 = vector.load %arg2[%c0_1, %c0_2] : memref<8x8xf32, #tpu.memory_space<vmem>>, vector<8x8xf32>
    %cst = arith.constant dense<0.000000e+00> : vector<32x8xf32>
    %2 = tpu.matmul %0, %1, %cst {dimension_numbers = #tpu.dot_dimension_numbers<[1], [0], [0], [1], [0, 0, 1, 1], [], []>} : vector<32x8xf32>, vector<8x8xf32>, vector<32x8xf32> -> vector<32x8xf32>
    %c0_3 = arith.constant 0 : index
    %c0_4 = arith.constant 0 : index
    %3 = vector.load %arg3[%c0_3, %c0_4] : memref<1x8xf32, #tpu.memory_space<vmem>>, vector<1x8xf32>
    %4 = vector.broadcast %3 : vector<1x8xf32> to vector<32x8xf32>
    %5 = arith.addf %2, %4 : vector<32x8xf32>
    %cst_5 = arith.constant 0.000000e+00 : f32
    %6 = vector.broadcast %cst_5 : f32 to vector<32x8xf32>
    %7 = arith.cmpf ogt, %5, %6 : vector<32x8xf32>
    %cst_6 = arith.constant 2.000000e-01 : f32
    %8 = vector.broadcast %cst_6 : f32 to vector<32x8xf32>
    %9 = arith.mulf %8, %5 : vector<32x8xf32>
    %10 = arith.select %7, %5, %9 : vector<32x8xi1>, vector<32x8xf32>
    %c0_7 = arith.constant 0 : index
    %c0_8 = arith.constant 0 : index
    %11 = vector.load %arg4[%c0_7, %c0_8] : memref<8x8xf32, #tpu.memory_space<vmem>>, vector<8x8xf32>
    %cst_9 = arith.constant dense<0.000000e+00> : vector<32x8xf32>
    %12 = tpu.matmul %10, %11, %cst_9 {dimension_numbers = #tpu.dot_dimension_numbers<[1], [0], [0], [1], [0, 0, 1, 1], [], []>} : vector<32x8xf32>, vector<8x8xf32>, vector<32x8xf32> -> vector<32x8xf32>
    %c0_10 = arith.constant 0 : index
    %c0_11 = arith.constant 0 : index
    %13 = vector.load %arg5[%c0_10, %c0_11] : memref<1x8xf32, #tpu.memory_space<vmem>>, vector<1x8xf32>
    %14 = vector.broadcast %13 : vector<1x8xf32> to vector<32x8xf32>
    %15 = arith.addf %12, %14 : vector<32x8xf32>
    %c0_12 = arith.constant 0 : index
    %c0_13 = arith.constant 0 : index
    %16 = vector.load %arg0[%c0_12, %c0_13] : memref<32x2xf32, #tpu.memory_space<vmem>>, vector<32x2xf32>
    %c0_14 = arith.constant 0 : index
    %c0_15 = arith.constant 0 : index
    %17 = vector.load %arg6[%c0_14, %c0_15] : memref<2x128xf32, #tpu.memory_space<vmem>>, vector<2x128xf32>
    %cst_16 = arith.constant dense<0.000000e+00> : vector<32x128xf32>
    %18 = tpu.matmul %16, %17, %cst_16 {dimension_numbers = #tpu.dot_dimension_numbers<[1], [0], [0], [1], [0, 0, 1, 1], [], []>} : vector<32x2xf32>, vector<2x128xf32>, vector<32x128xf32> -> vector<32x128xf32>
    %c0_17 = arith.constant 0 : index
    %c0_18 = arith.constant 0 : index
    %19 = vector.load %arg7[%c0_17, %c0_18] : memref<8x128xf32, #tpu.memory_space<vmem>>, vector<8x128xf32>
    %cst_19 = arith.constant dense<0.000000e+00> : vector<32x128xf32>
    %20 = tpu.matmul %15, %19, %cst_19 {dimension_numbers = #tpu.dot_dimension_numbers<[1], [0], [0], [1], [0, 0, 1, 1], [], []>} : vector<32x8xf32>, vector<8x128xf32>, vector<32x128xf32> -> vector<32x128xf32>
    %21 = arith.addf %18, %20 : vector<32x128xf32>
    %c0_20 = arith.constant 0 : index
    %c0_21 = arith.constant 0 : index
    %22 = vector.load %arg8[%c0_20, %c0_21] : memref<1x128xf32, #tpu.memory_space<vmem>>, vector<1x128xf32>
    %23 = vector.broadcast %22 : vector<1x128xf32> to vector<32x128xf32>
    %24 = arith.addf %21, %23 : vector<32x128xf32>
    %cst_22 = arith.constant 0.000000e+00 : f32
    %25 = vector.broadcast %cst_22 : f32 to vector<2x32x128xf32>
    %c0_23 = arith.constant 0 : index
    %c0_24 = arith.constant 0 : index
    %c0_25 = arith.constant 0 : index
    %26 = vector.load %arg14[%c0_23, %c0_24, %c0_25] : memref<2x32x128xf32, #tpu.memory_space<vmem>>, vector<2x32x128xf32>
    tpu.vector_store %arg14[%c0_23, %c0_24, %c0_25], %25 {strides = array<i32>} : memref<2x32x128xf32, #tpu.memory_space<vmem>>, vector<2x32x128xf32>,
    %27 = vector.shape_cast %24 : vector<32x128xf32> to vector<2x16x128xf32>
    %c0_26 = arith.constant 0 : index
    %c8 = arith.constant 8 : index
    %c0_27 = arith.constant 0 : index
    %28 = vector.load %arg14[%c0_26, %c8, %c0_27] : memref<2x32x128xf32, #tpu.memory_space<vmem>>, vector<2x16x128xf32>
    tpu.vector_store %arg14[%c0_26, %c8, %c0_27], %27 {strides = array<i32>} : memref<2x32x128xf32, #tpu.memory_space<vmem>>, vector<2x16x128xf32>,
    %c0_28 = arith.constant 0 : index
    %c0_29 = arith.constant 0 : index
    %c0_30 = arith.constant 0 : index
    %c0_31 = arith.constant 0 : index
    %29 = vector.load %arg9[%c0_28, %c0_29, %c0_30, %c0_31] : memref<3x3x128x128xf32, #tpu.memory_space<vmem>>, vector<1x3x128x128xf32>
    %30 = vector.shape_cast %29 : vector<1x3x128x128xf32> to vector<3x128x128xf32>
    %c0_32 = arith.constant 0 : index
    %c0_33 = arith.constant 0 : index
    %c0_34 = arith.constant 0 : index
    %31 = vector.load %arg10[%c0_32, %c0_33, %c0_34] : memref<3x1x128xf32, #tpu.memory_space<vmem>>, vector<1x1x128xf32>
    %32 = vector.shape_cast %31 : vector<1x1x128xf32> to vector<1x128xf32>
    %cst_35 = arith.constant 0.000000e+00 : f32
    %33 = vector.broadcast %cst_35 : f32 to vector<32x128xf32>
    %c0_36 = arith.constant 0 : index
    %c7 = arith.constant 7 : index
    %c0_37 = arith.constant 0 : index
    %34 = vector.load %arg14[%c0_36, %c7, %c0_37] : memref<2x32x128xf32, #tpu.memory_space<vmem>>, vector<2x16x128xf32>
    %35 = vector.shape_cast %34 : vector<2x16x128xf32> to vector<32x128xf32>
    %36 = vector.extract_strided_slice %30 {offsets = [0, 0, 0], sizes = [1, 128, 128], strides = [1, 1, 1]} : vector<3x128x128xf32> to vector<1x128x128xf32>
    %37 = vector.shape_cast %36 : vector<1x128x128xf32> to vector<128x128xf32>
    %cst_38 = arith.constant dense<0.000000e+00> : vector<32x128xf32>
    %38 = tpu.matmul %35, %37, %cst_38 {dimension_numbers = #tpu.dot_dimension_numbers<[1], [0], [0], [1], [0, 0, 1, 1], [], []>} : vector<32x128xf32>, vector<128x128xf32>, vector<32x128xf32> -> vector<32x128xf32>
    %39 = arith.addf %33, %38 : vector<32x128xf32>
    %c0_39 = arith.constant 0 : index
    %c8_40 = arith.constant 8 : index
    %c0_41 = arith.constant 0 : index
    %40 = vector.load %arg14[%c0_39, %c8_40, %c0_41] : memref<2x32x128xf32, #tpu.memory_space<vmem>>, vector<2x16x128xf32>
    %41 = vector.shape_cast %40 : vector<2x16x128xf32> to vector<32x128xf32>
    %42 = vector.extract_strided_slice %30 {offsets = [1, 0, 0], sizes = [1, 128, 128], strides = [1, 1, 1]} : vector<3x128x128xf32> to vector<1x128x128xf32>
    %43 = vector.shape_cast %42 : vector<1x128x128xf32> to vector<128x128xf32>
    %cst_42 = arith.constant dense<0.000000e+00> : vector<32x128xf32>
    %44 = tpu.matmul %41, %43, %cst_42 {dimension_numbers = #tpu.dot_dimension_numbers<[1], [0], [0], [1], [0, 0, 1, 1], [], []>} : vector<32x128xf32>, vector<128x128xf32>, vector<32x128xf32> -> vector<32x128xf32>
    %45 = arith.addf %39, %44 : vector<32x128xf32>
    %c0_43 = arith.constant 0 : index
    %c9 = arith.constant 9 : index
    %c0_44 = arith.constant 0 : index
    %46 = vector.load %arg14[%c0_43, %c9, %c0_44] : memref<2x32x128xf32, #tpu.memory_space<vmem>>, vector<2x16x128xf32>
    %47 = vector.shape_cast %46 : vector<2x16x128xf32> to vector<32x128xf32>
    %48 = vector.extract_strided_slice %30 {offsets = [2, 0, 0], sizes = [1, 128, 128], strides = [1, 1, 1]} : vector<3x128x128xf32> to vector<1x128x128xf32>
    %49 = vector.shape_cast %48 : vector<1x128x128xf32> to vector<128x128xf32>
    %cst_45 = arith.constant dense<0.000000e+00> : vector<32x128xf32>
    %50 = tpu.matmul %47, %49, %cst_45 {dimension_numbers = #tpu.dot_dimension_numbers<[1], [0], [0], [1], [0, 0, 1, 1], [], []>} : vector<32x128xf32>, vector<128x128xf32>, vector<32x128xf32> -> vector<32x128xf32>
    %51 = arith.addf %45, %50 : vector<32x128xf32>
    %52 = vector.broadcast %32 : vector<1x128xf32> to vector<32x128xf32>
    %53 = arith.addf %51, %52 : vector<32x128xf32>
    %cst_46 = arith.constant 0.000000e+00 : f32
    %54 = vector.broadcast %cst_46 : f32 to vector<32x128xf32>
    %55 = arith.cmpf ogt, %53, %54 : vector<32x128xf32>
    %cst_47 = arith.constant 2.000000e-01 : f32
    %56 = vector.broadcast %cst_47 : f32 to vector<32x128xf32>
    %57 = arith.mulf %56, %53 : vector<32x128xf32>
    %58 = arith.select %55, %53, %57 : vector<32x128xi1>, vector<32x128xf32>
    %59 = vector.shape_cast %58 : vector<32x128xf32> to vector<2x16x128xf32>
    %c0_48 = arith.constant 0 : index
    %c8_49 = arith.constant 8 : index
    %c0_50 = arith.constant 0 : index
    %60 = vector.load %arg14[%c0_48, %c8_49, %c0_50] : memref<2x32x128xf32, #tpu.memory_space<vmem>>, vector<2x16x128xf32>
    tpu.vector_store %arg14[%c0_48, %c8_49, %c0_50], %59 {strides = array<i32>} : memref<2x32x128xf32, #tpu.memory_space<vmem>>, vector<2x16x128xf32>,
    %c1 = arith.constant 1 : index
    %c0_51 = arith.constant 0 : index
    %c0_52 = arith.constant 0 : index
    %c0_53 = arith.constant 0 : index
    %61 = vector.load %arg9[%c1, %c0_51, %c0_52, %c0_53] : memref<3x3x128x128xf32, #tpu.memory_space<vmem>>, vector<1x3x128x128xf32>
    %62 = vector.shape_cast %61 : vector<1x3x128x128xf32> to vector<3x128x128xf32>
    %c1_54 = arith.constant 1 : index
    %c0_55 = arith.constant 0 : index
    %c0_56 = arith.constant 0 : index
    %63 = vector.load %arg10[%c1_54, %c0_55, %c0_56] : memref<3x1x128xf32, #tpu.memory_space<vmem>>, vector<1x1x128xf32>
    %64 = vector.shape_cast %63 : vector<1x1x128xf32> to vector<1x128xf32>
    %cst_57 = arith.constant 0.000000e+00 : f32
    %65 = vector.broadcast %cst_57 : f32 to vector<32x128xf32>
    %c0_58 = arith.constant 0 : index
    %c6 = arith.constant 6 : index
    %c0_59 = arith.constant 0 : index
    %66 = vector.load %arg14[%c0_58, %c6, %c0_59] : memref<2x32x128xf32, #tpu.memory_space<vmem>>, vector<2x16x128xf32>
    %67 = vector.shape_cast %66 : vector<2x16x128xf32> to vector<32x128xf32>
    %68 = vector.extract_strided_slice %62 {offsets = [0, 0, 0], sizes = [1, 128, 128], strides = [1, 1, 1]} : vector<3x128x128xf32> to vector<1x128x128xf32>
    %69 = vector.shape_cast %68 : vector<1x128x128xf32> to vector<128x128xf32>
    %cst_60 = arith.constant dense<0.000000e+00> : vector<32x128xf32>
    %70 = tpu.matmul %67, %69, %cst_60 {dimension_numbers = #tpu.dot_dimension_numbers<[1], [0], [0], [1], [0, 0, 1, 1], [], []>} : vector<32x128xf32>, vector<128x128xf32>, vector<32x128xf32> -> vector<32x128xf32>
    %71 = arith.addf %65, %70 : vector<32x128xf32>
    %c0_61 = arith.constant 0 : index
    %c8_62 = arith.constant 8 : index
    %c0_63 = arith.constant 0 : index
    %72 = vector.load %arg14[%c0_61, %c8_62, %c0_63] : memref<2x32x128xf32, #tpu.memory_space<vmem>>, vector<2x16x128xf32>
    %73 = vector.shape_cast %72 : vector<2x16x128xf32> to vector<32x128xf32>
    %74 = vector.extract_strided_slice %62 {offsets = [1, 0, 0], sizes = [1, 128, 128], strides = [1, 1, 1]} : vector<3x128x128xf32> to vector<1x128x128xf32>
    %75 = vector.shape_cast %74 : vector<1x128x128xf32> to vector<128x128xf32>
    %cst_64 = arith.constant dense<0.000000e+00> : vector<32x128xf32>
    %76 = tpu.matmul %73, %75, %cst_64 {dimension_numbers = #tpu.dot_dimension_numbers<[1], [0], [0], [1], [0, 0, 1, 1], [], []>} : vector<32x128xf32>, vector<128x128xf32>, vector<32x128xf32> -> vector<32x128xf32>
    %77 = arith.addf %71, %76 : vector<32x128xf32>
    %c0_65 = arith.constant 0 : index
    %c10 = arith.constant 10 : index
    %c0_66 = arith.constant 0 : index
    %78 = vector.load %arg14[%c0_65, %c10, %c0_66] : memref<2x32x128xf32, #tpu.memory_space<vmem>>, vector<2x16x128xf32>
    %79 = vector.shape_cast %78 : vector<2x16x128xf32> to vector<32x128xf32>
    %80 = vector.extract_strided_slice %62 {offsets = [2, 0, 0], sizes = [1, 128, 128], strides = [1, 1, 1]} : vector<3x128x128xf32> to vector<1x128x128xf32>
    %81 = vector.shape_cast %80 : vector<1x128x128xf32> to vector<128x128xf32>
    %cst_67 = arith.constant dense<0.000000e+00> : vector<32x128xf32>
    %82 = tpu.matmul %79, %81, %cst_67 {dimension_numbers = #tpu.dot_dimension_numbers<[1], [0], [0], [1], [0, 0, 1, 1], [], []>} : vector<32x128xf32>, vector<128x128xf32>, vector<32x128xf32> -> vector<32x128xf32>
    %83 = arith.addf %77, %82 : vector<32x128xf32>
    %84 = vector.broadcast %64 : vector<1x128xf32> to vector<32x128xf32>
    %85 = arith.addf %83, %84 : vector<32x128xf32>
    %cst_68 = arith.constant 0.000000e+00 : f32
    %86 = vector.broadcast %cst_68 : f32 to vector<32x128xf32>
    %87 = arith.cmpf ogt, %85, %86 : vector<32x128xf32>
    %cst_69 = arith.constant 2.000000e-01 : f32
    %88 = vector.broadcast %cst_69 : f32 to vector<32x128xf32>
    %89 = arith.mulf %88, %85 : vector<32x128xf32>
    %90 = arith.select %87, %85, %89 : vector<32x128xi1>, vector<32x128xf32>
    %91 = vector.shape_cast %90 : vector<32x128xf32> to vector<2x16x128xf32>
    %c0_70 = arith.constant 0 : index
    %c8_71 = arith.constant 8 : index
    %c0_72 = arith.constant 0 : index
    %92 = vector.load %arg14[%c0_70, %c8_71, %c0_72] : memref<2x32x128xf32, #tpu.memory_space<vmem>>, vector<2x16x128xf32>
    tpu.vector_store %arg14[%c0_70, %c8_71, %c0_72], %91 {strides = array<i32>} : memref<2x32x128xf32, #tpu.memory_space<vmem>>, vector<2x16x128xf32>,
    %c2 = arith.constant 2 : index
    %c0_73 = arith.constant 0 : index
    %c0_74 = arith.constant 0 : index
    %c0_75 = arith.constant 0 : index
    %93 = vector.load %arg9[%c2, %c0_73, %c0_74, %c0_75] : memref<3x3x128x128xf32, #tpu.memory_space<vmem>>, vector<1x3x128x128xf32>
    %94 = vector.shape_cast %93 : vector<1x3x128x128xf32> to vector<3x128x128xf32>
    %c2_76 = arith.constant 2 : index
    %c0_77 = arith.constant 0 : index
    %c0_78 = arith.constant 0 : index
    %95 = vector.load %arg10[%c2_76, %c0_77, %c0_78] : memref<3x1x128xf32, #tpu.memory_space<vmem>>, vector<1x1x128xf32>
    %96 = vector.shape_cast %95 : vector<1x1x128xf32> to vector<1x128xf32>
    %cst_79 = arith.constant 0.000000e+00 : f32
    %97 = vector.broadcast %cst_79 : f32 to vector<32x128xf32>
    %c0_80 = arith.constant 0 : index
    %c4 = arith.constant 4 : index
    %c0_81 = arith.constant 0 : index
    %98 = vector.load %arg14[%c0_80, %c4, %c0_81] : memref<2x32x128xf32, #tpu.memory_space<vmem>>, vector<2x16x128xf32>
    %99 = vector.shape_cast %98 : vector<2x16x128xf32> to vector<32x128xf32>
    %100 = vector.extract_strided_slice %94 {offsets = [0, 0, 0], sizes = [1, 128, 128], strides = [1, 1, 1]} : vector<3x128x128xf32> to vector<1x128x128xf32>
    %101 = vector.shape_cast %100 : vector<1x128x128xf32> to vector<128x128xf32>
    %cst_82 = arith.constant dense<0.000000e+00> : vector<32x128xf32>
    %102 = tpu.matmul %99, %101, %cst_82 {dimension_numbers = #tpu.dot_dimension_numbers<[1], [0], [0], [1], [0, 0, 1, 1], [], []>} : vector<32x128xf32>, vector<128x128xf32>, vector<32x128xf32> -> vector<32x128xf32>
    %103 = arith.addf %97, %102 : vector<32x128xf32>
    %c0_83 = arith.constant 0 : index
    %c8_84 = arith.constant 8 : index
    %c0_85 = arith.constant 0 : index
    %104 = vector.load %arg14[%c0_83, %c8_84, %c0_85] : memref<2x32x128xf32, #tpu.memory_space<vmem>>, vector<2x16x128xf32>
    %105 = vector.shape_cast %104 : vector<2x16x128xf32> to vector<32x128xf32>
    %106 = vector.extract_strided_slice %94 {offsets = [1, 0, 0], sizes = [1, 128, 128], strides = [1, 1, 1]} : vector<3x128x128xf32> to vector<1x128x128xf32>
    %107 = vector.shape_cast %106 : vector<1x128x128xf32> to vector<128x128xf32>
    %cst_86 = arith.constant dense<0.000000e+00> : vector<32x128xf32>
    %108 = tpu.matmul %105, %107, %cst_86 {dimension_numbers = #tpu.dot_dimension_numbers<[1], [0], [0], [1], [0, 0, 1, 1], [], []>} : vector<32x128xf32>, vector<128x128xf32>, vector<32x128xf32> -> vector<32x128xf32>
    %109 = arith.addf %103, %108 : vector<32x128xf32>
    %c0_87 = arith.constant 0 : index
    %c12 = arith.constant 12 : index
    %c0_88 = arith.constant 0 : index
    %110 = vector.load %arg14[%c0_87, %c12, %c0_88] : memref<2x32x128xf32, #tpu.memory_space<vmem>>, vector<2x16x128xf32>
    %111 = vector.shape_cast %110 : vector<2x16x128xf32> to vector<32x128xf32>
    %112 = vector.extract_strided_slice %94 {offsets = [2, 0, 0], sizes = [1, 128, 128], strides = [1, 1, 1]} : vector<3x128x128xf32> to vector<1x128x128xf32>
    %113 = vector.shape_cast %112 : vector<1x128x128xf32> to vector<128x128xf32>
    %cst_89 = arith.constant dense<0.000000e+00> : vector<32x128xf32>
    %114 = tpu.matmul %111, %113, %cst_89 {dimension_numbers = #tpu.dot_dimension_numbers<[1], [0], [0], [1], [0, 0, 1, 1], [], []>} : vector<32x128xf32>, vector<128x128xf32>, vector<32x128xf32> -> vector<32x128xf32>
    %115 = arith.addf %109, %114 : vector<32x128xf32>
    %116 = vector.broadcast %96 : vector<1x128xf32> to vector<32x128xf32>
    %117 = arith.addf %115, %116 : vector<32x128xf32>
    %cst_90 = arith.constant 0.000000e+00 : f32
    %118 = vector.broadcast %cst_90 : f32 to vector<32x128xf32>
    %119 = arith.cmpf ogt, %117, %118 : vector<32x128xf32>
    %cst_91 = arith.constant 2.000000e-01 : f32
    %120 = vector.broadcast %cst_91 : f32 to vector<32x128xf32>
    %121 = arith.mulf %120, %117 : vector<32x128xf32>
    %122 = arith.select %119, %117, %121 : vector<32x128xi1>, vector<32x128xf32>
    %123 = vector.shape_cast %122 : vector<32x128xf32> to vector<2x16x128xf32>
    %c0_92 = arith.constant 0 : index
    %c8_93 = arith.constant 8 : index
    %c0_94 = arith.constant 0 : index
    %124 = vector.load %arg14[%c0_92, %c8_93, %c0_94] : memref<2x32x128xf32, #tpu.memory_space<vmem>>, vector<2x16x128xf32>
    tpu.vector_store %arg14[%c0_92, %c8_93, %c0_94], %123 {strides = array<i32>} : memref<2x32x128xf32, #tpu.memory_space<vmem>>, vector<2x16x128xf32>,
    %c0_95 = arith.constant 0 : index
    %c8_96 = arith.constant 8 : index
    %c0_97 = arith.constant 0 : index
    %125 = vector.load %arg14[%c0_95, %c8_96, %c0_97] : memref<2x32x128xf32, #tpu.memory_space<vmem>>, vector<2x16x128xf32>
    %126 = vector.shape_cast %125 : vector<2x16x128xf32> to vector<32x128xf32>
    %c0_98 = arith.constant 0 : index
    %c0_99 = arith.constant 0 : index
    %127 = vector.load %arg11[%c0_98, %c0_99] : memref<128x128xf32, #tpu.memory_space<vmem>>, vector<128x128xf32>
    %cst_100 = arith.constant dense<0.000000e+00> : vector<32x128xf32>
    %128 = tpu.matmul %126, %127, %cst_100 {dimension_numbers = #tpu.dot_dimension_numbers<[1], [0], [0], [1], [0, 0, 1, 1], [], []>} : vector<32x128xf32>, vector<128x128xf32>, vector<32x128xf32> -> vector<32x128xf32>
    %c0_101 = arith.constant 0 : index
    %c0_102 = arith.constant 0 : index
    %129 = vector.load %arg12[%c0_101, %c0_102] : memref<1x128xf32, #tpu.memory_space<vmem>>, vector<1x128xf32>
    %130 = vector.broadcast %129 : vector<1x128xf32> to vector<32x128xf32>
    %131 = arith.addf %128, %130 : vector<32x128xf32>
    %c0_103 = arith.constant 0 : index
    %c0_104 = arith.constant 0 : index
    %132 = vector.load %arg13[%c0_103, %c0_104] : memref<32x128xf32, #tpu.memory_space<vmem>>, vector<32x128xf32>
    tpu.vector_store %arg13[%c0_103, %c0_104], %131 {strides = array<i32>} : memref<32x128xf32, #tpu.memory_space<vmem>>, vector<32x128xf32>,
    return
  }
}

</mosaic_0001>

<bundles_post_ra>
// kernel: tpu_custom_call.1
= control target key start
LH: loop header
LB: loop body
LE: loop exit
PB: predicated region body
PF: predicated region fallthrough
CT: control target
= control target key end

     0   :  { %18 = vsyncpa [#allocation4], 0  ;;  %s2988_s0 = inlined_call_operand.vmem [shape: f32[32,2], index: 0, kind: input, shape index: {}]   ;;  %s2989_s1 = inlined_call_operand.vmem [shape: f32[32,8], index: 1, kind: input, shape index: {}]   ;;  %s2990_s2 = inlined_call_operand.vmem [shape: f32[8,8], index: 2, kind: input, shape index: {}]   ;;  %s2991_s3 = inlined_call_operand.vmem [shape: f32[1,8], index: 3, kind: input, shape index: {}]   ;;  %s2992_s4 = inlined_call_operand.vmem [shape: f32[8,8], index: 4, kind: input, shape index: {}]   ;;  %s2993_s5 = inlined_call_operand.vmem [shape: f32[1,8], index: 5, kind: input, shape index: {}]   ;;  %s2994_s6 = inlined_call_operand.vmem [shape: f32[2,128], index: 6, kind: input, shape index: {}]   ;;  %s2995_s7 = inlined_call_operand.vmem [shape: f32[8,128], index: 7, kind: input, shape index: {}]   ;;  %s2996_s8 = inlined_call_operand.vmem [shape: f32[1,128], index: 8, kind: input, shape index: {}]   ;;  %s2997_s9 = inlined_call_operand.hbm [shape: f32[3,3,128,128], index: 9, kind: input, shape index: {}]   ;;  %s2998_s10 = inlined_call_operand.vmem [shape: f32[3,1,128], index: 10, kind: input, shape index: {}]   ;;  %s2999_s11 = inlined_call_operand.hbm [shape: f32[128,128], index: 11, kind: input, shape index: {}]   ;;  %s3000_s12 = inlined_call_operand.vmem [shape: f32[1,128], index: 12, kind: input, shape index: {}]   ;;  %s3001_s13 = inlined_call_operand.hbm [shape: f32[32,128], index: 13, kind: output, shape index: {}]  }
   0x1   :  { %19 = vsyncpa [#allocation7], 0 }
   0x2   :  { %20 = vsyncpa [#allocation5], 0  ;;  %s2788_s25 = smov [#allocation3]   ;;  %s2716_s29 = scalar_lea.hbm %s2997_s9, 18432 }
   0x3   :  { %s44_s26 = sshll.u32 %s2788_s25, 4  ;;  %p2717_p0 = scmp.ne.s32.totalorder %s2997_s9, %s2716_s29  ;;  %s45_s26 = int_to_ptr.vmem [resolvable:$true] %s44_s26 }
   0x4   :  { %p2720_p1 = scmp.lt.u32.totalorder %s2716_s29, %s2997_s9 }
   0x6   :  { %p2722_p2 = pnand %p2720_p1, %p2717_p0 }
   0x8   :  { %2725 = shalt.err (!%p2722_p2)
}
   0x9   :  { %s2726_s17 = scalar_lea.vmem %s45_s26, 18432  ;;  %p2731_p4 = scmp.lt.s32.totalorder %s45_s26, %s45_s26 }
   0xa   :  { %p2727_p3 = scmp.ne.s32.totalorder %s45_s26, %s2726_s17  ;;  %p2732_p5 = scmp.lt.s32.totalorder %s2726_s17, %s2726_s17 }
   0xc   :  { %p2733_p6 = por %p2732_p5, %p2731_p4 }
   0xe   :  { %p2734_p7 = pnand %p2733_p6, %p2727_p3 }
  0x10   :  { %2737 = shalt.err (!%p2734_p7)
}
  0x11   :  { %s2789_s18 = smov 128   ;;  %s2790_s19 = smov 8  }
  0x12   :  { %50 = dma.hbm_to_vmem [thread:$0]  %s2997_s9, 18432, %s45_s26, [#allocation4], %s2789_s18, %s2789_s18, %s2790_s19  }
  0x13   :  { %s2791_s22 = smov [#allocation6]   ;;  %s2738_s27 = scalar_lea.hbm %s2999_s11, 2048 }
  0x14   :  { %s58_s23 = sshll.u32 %s2791_s22, 4  ;;  %p2739_p8 = scmp.ne.s32.totalorder %s2999_s11, %s2738_s27  ;;  %s59_s23 = int_to_ptr.vmem [resolvable:$true] %s58_s23 }
  0x15   :  { %p2742_p9 = scmp.lt.u32.totalorder %s2738_s27, %s2999_s11 }
  0x17   :  { %p2744_p10 = pnand %p2742_p9, %p2739_p8 }
  0x19   :  { %2747 = shalt.err (!%p2744_p10)
}
  0x1a   :  { %s2748_s15 = scalar_lea.vmem %s59_s23, 2048  ;;  %p2753_p12 = scmp.lt.s32.totalorder %s59_s23, %s59_s23 }
  0x1b   :  { %p2749_p11 = scmp.ne.s32.totalorder %s59_s23, %s2748_s15  ;;  %p2754_p13 = scmp.lt.s32.totalorder %s2748_s15, %s2748_s15 }
  0x1d   :  { %p2755_p0 = por %p2754_p13, %p2753_p12 }
  0x1f   :  { %p2756_p1 = pnand %p2755_p0, %p2749_p11 }
  0x21   :  { %2759 = shalt.err (!%p2756_p1)
}
  0x22   :  { %64 = dma.hbm_to_vmem [thread:$0]  %s2999_s11, 2048, %s59_s23, [#allocation7], %s2789_s18, %s2789_s18, %s2790_s19  }
  0x23   :  { %2782 = dma.done.wait [#allocation4], 18432  }
  0x24   :  { %2783 = vsyncadd [#allocation4], 4294948864 }
  0x25   :  { %2784 = dma.done.wait [#allocation7], 2048  }
  0x26   :  { %2785 = vsyncadd [#allocation7], 4294965248  ;;  %vm85_vm0 = vcmask 64512   ;;  %v77_v0 = vld [vmem:[%s2990_s2] sm:$0xff]  ;;  %v74_v2 = vld [vmem:[%s2989_s1 + $0x8] sm:$0xff]  ;;  %vm416_vm5 = vcmask 1041408  }
  0x27   :  { %v73_v1 = vld [vmem:[%s2989_s1] sm:$0xff]  ;;  %1950 = vmatprep.subr.mxu1 %v77_v0  ;;  %v75_v3 = vld [vmem:[%s2989_s1 + $0x10] sm:$0xff]  ;;  %v76_v5 = vld [vmem:[%s2989_s1 + $0x18] sm:$0xff]  ;;  %vm403_vm6 = vcmask 15360   ;;  %s2793_s28 = smov [#allocation8]  }
  0x28   :  { %1952 = vmatprep.mubr.msk.f32.mxu1 %vm85_vm0, %v73_v1  ;;  %v195_v4 = vld [vmem:[%s2992_s4] sm:$0xff]  ;;  %1951 = vmatpush3.msra.mxu1 %v77_v0  ;;  %v529_v26 = vld [vmem:[#allocation3 + $0x8] sm:$0xff]  ;;  %v530_v28 = vld [vmem:[#allocation3 + $0x10] sm:$0xff]  ;;  %s1691_s29 = sshll.u32 %s2793_s28, 4  ;;  %s1692_s29 = int_to_ptr.vmem [resolvable:$true] %s1691_s29 }
  0x29   :  { %1953 = vmatmul.mubr.msk.f32.vlgmr.msra.gmra.mrb[0].mxu1 %vm85_vm0, %v74_v2  ;;  %1958 = vmatprep.subr.mxu1 %v195_v4  ;;  %v1704_v6 = vld [vmem:[%s2991_s3] ss:$0 sm:$0xff]  ;;  %v531_v29 = vld [vmem:[#allocation3 + $0x18] sm:$0xff]  ;;  %v533_v32 = vld [vmem:[#allocation3 + $0x28] sm:$0xff]  ;;  %s2760_s30 = scalar_lea.vmem %s1692_s29, 512  ;;  %p2765_p3 = scmp.lt.s32.totalorder %s1692_s29, %s1692_s29 }
  0x2a   :  { %1955 = vmatprep.mubr.msk.f32.mxu1 %vm85_vm0, %v75_v3  ;;  %1959 = vmatpush3.msra.mxu1 %v195_v4  ;;  %v305_v23 = vld [vmem:[%s2995_s7] sm:$0xff]  ;;  %v2398_v30 = vpack.c.bf16 %v531_v29, %v530_v28  ;;  %v534_v34 = vld [vmem:[#allocation3 + $0x30] sm:$0xff]  ;;  %v535_v35 = vld [vmem:[#allocation3 + $0x38] sm:$0xff]  ;;  %p2761_p2 = scmp.ne.s32.totalorder %s1692_s29, %s2760_s30  ;;  %p2766_p4 = scmp.lt.s32.totalorder %s2760_s30, %s2760_s30 }
  0x2b   :  { %1966 = vmatprep.subr.mxu0 %v305_v23  ;;  %v304_v24 = vld [vmem:[%s2994_s6] sm:$0x3]  ;;  %v2406_v36 = vpack.c.bf16 %v535_v35, %v534_v34  ;;  %v537_v38 = vld [vmem:[#allocation3 + $0x48] sm:$0xff]  ;;  %v546_v53 = vld [vmem:[#allocation3 + $0x90] sm:$0xff] }
  0x2c   :  { %1967 = vmatpush3.msra.mxu0 %v305_v23  ;;  %v528_v25 = vld [vmem:[#allocation3] sm:$0xff]  ;;  %v545_v43 = vld [vmem:[#allocation3 + $0x88] sm:$0xff]  ;;  %v547_v54 = vld [vmem:[#allocation3 + $0x98] sm:$0xff]  ;;  %p2767_p5 = por %p2766_p4, %p2765_p3 }
  0x2d   :  { %1956 = vmatmul.mubr.msk.f32.gmra.mrb[2].mxu1 %vm85_vm0, %v76_v5  ;;  %1974 = vmatprep.subr.msk.mxu0 %vm416_vm5, %v304_v24  ;;  %v2394_v27 = vpack.c.bf16 %v529_v26, %v528_v25  ;;  %v532_v31 = vld [vmem:[#allocation3 + $0x20] sm:$0xff]  ;;  %v301_v55 = vld [vmem:[%s2988_s0 + $0x8] sm:$0xff]  ;;  %v302_v56 = vld [vmem:[%s2988_s0 + $0x10] sm:$0xff]  ;;  %v2366_v57 = vpack.c.bf16 %v547_v54, %v546_v53 }
  0x2e   :  { %v2402_v33 = vpack.c.bf16 %v533_v32, %v532_v31  ;;  %v536_v37 = vld [vmem:[#allocation3 + $0x40] sm:$0xff]  ;;  %v549_v59 = vld [vmem:[#allocation3 + $0xa8] sm:$0xff]  ;;  %v303_v60 = vld [vmem:[%s2988_s0 + $0x18] sm:$0xff]  ;;  %p2768_p6 = pnand %p2767_p5, %p2761_p2 }
  0x2f   :  { %2395 = vmatprep.subr.bf16.mxu1 %v2394_v27  ;;  %v2410_v39 = vpack.c.bf16 %v537_v38, %v536_v37  ;;  %v1709_v40 = vld [vmem:[%s2993_s5] ss:$0 sm:$0xff]  ;;  %v550_v62 = vld [vmem:[#allocation3 + $0xb0] sm:$0xff]  ;;  %v551_v63 = vld [vmem:[#allocation3 + $0xb8] sm:$0xff] }
  0x30   :  { %v544_v42 = vld [vmem:[#allocation3 + $0x80] sm:$0xff]  ;;  %v2374_v0 = vpack.c.bf16 %v551_v63, %v550_v62  ;;  %v553_v2 = vld [vmem:[#allocation3 + $0xc8] sm:$0xff]  ;;  %v554_v4 = vld [vmem:[#allocation3 + $0xd0] sm:$0xff] }
  0x31   :  { %v2362_v47 = vpack.c.bf16 %v545_v43, %v544_v42  ;;  %v300_v52 = vld [vmem:[%s2988_s0] sm:$0xff]  ;;  %v555_v5 = vld [vmem:[#allocation3 + $0xd8] sm:$0xff]  ;;  %v562_v35 = vld [vmem:[#allocation3 + $0x110] sm:$0xff] }
  0x32   :  { %v548_v58 = vld [vmem:[#allocation3 + $0xa0] sm:$0xff]  ;;  %v571_v53 = vld [vmem:[#allocation3 + $0x158] sm:$0xff] }
  0x33   :  { %v2370_v61 = vpack.c.bf16 %v549_v59, %v548_v58  ;;  %v552_v1 = vld [vmem:[#allocation3 + $0xc0] sm:$0xff]  ;;  %v574_v58 = vld [vmem:[#allocation3 + $0x170] sm:$0xff]  ;;  %v575_v59 = vld [vmem:[#allocation3 + $0x178] sm:$0xff] }
  0x34   :  { %v2378_v3 = vpack.c.bf16 %v553_v2, %v552_v1  ;;  %v560_v23 = vld [vmem:[#allocation3 + $0x100] sm:$0xff]  ;;  %v892_v1 = vld [vmem:[#allocation3 + $0x208] sm:$0xff]  ;;  %v893_v2 = vld [vmem:[#allocation3 + $0x210] sm:$0xff] }
  0x35   :  { %v1723_v26 = vld [vmem:[%s2996_s8] ss:$0 sm:$0xff] }
  0xfc   :  { %v1954_v7 = vpop.f32.mrb[0].mxu1 }
  0xfd   :  { %v170_v8 = vadd.f32 %v1954_v7, %v1704_v6  ;;  %v164_v9 = vpop.f32.mrb[1].mxu1  ;;  %v556_v7 = vld [vmem:[#allocation3 + $0xe0] sm:$0xff] }
  0xfe   :  { %v165_v10 = vadd.f32 %v1704_v6, %v164_v9 }
  0xff   :  { %v188_v11 = vmul.f32 0.2, %v170_v8  ;;  %vm184_vm1 = vcmp.gt.f32.partialorder %v170_v8, 0.0 }
 0x100   :  { %vm183_vm2 = vcmp.gt.f32.partialorder %v165_v10, 0.0  ;;  %v187_v12 = vmul.f32 0.2, %v165_v10  ;;  %v1957_v13 = vpop.f32.mrb[2].mxu1 }
 0x101   :  { %v180_v14 = vadd.f32 %v1957_v13, %v1704_v6  ;;  %v174_v15 = vpop.f32.mrb[3].mxu1  ;;  %v192_v18 = vsel %vm184_vm1, %v170_v8, %v188_v11  ;;  %v557_v8 = vld [vmem:[#allocation3 + $0xe8] sm:$0xff]  ;;  %v539_v11 = vld [vmem:[#allocation3 + $0x58] sm:$0xff]  ;;  %v558_v13 = vld [vmem:[#allocation3 + $0xf0] sm:$0xff] }
 0x102   :  { %v175_v16 = vadd.f32 %v1704_v6, %v174_v15  ;;  %v191_v17 = vsel %vm183_vm2, %v165_v10, %v187_v12  ;;  %v2382_v6 = vpack.c.bf16 %v555_v5, %v554_v4  ;;  %v2386_v9 = vpack.c.bf16 %v557_v8, %v556_v7  ;;  %v538_v10 = vld [vmem:[#allocation3 + $0x50] sm:$0xff]  ;;  %v894_v4 = vld [vmem:[#allocation3 + $0x218] sm:$0xff]  ;;  %v896_v7 = vld [vmem:[#allocation3 + $0x228] sm:$0xff] }
 0x103   :  { %v190_v19 = vmul.f32 0.2, %v180_v14  ;;  %1960 = vmatprep.mubr.msk.f32.mxu1 %vm85_vm0, %v191_v17  ;;  %vm186_vm3 = vcmp.gt.f32.partialorder %v180_v14, 0.0  ;;  %v2414_v12 = vpack.c.bf16 %v539_v11, %v538_v10  ;;  %v541_v17 = vld [vmem:[#allocation3 + $0x68] sm:$0xff]  ;;  %v2462_v5 = vpack.c.bf16 %v894_v4, %v893_v2  ;;  %v898_v10 = vld [vmem:[#allocation3 + $0x238] sm:$0xff] }
 0x104   :  { %vm185_vm4 = vcmp.gt.f32.partialorder %v175_v16, 0.0  ;;  %v189_v20 = vmul.f32 0.2, %v175_v16  ;;  %1961 = vmatmul.mubr.msk.f32.vlgmr.msra.gmra.mrb[4].mxu1 %vm85_vm0, %v192_v18  ;;  %v2792_v18 = vmov 0.0   ;;  %v880_v4 = vld [vmem:[#allocation3 + $0x1a8] sm:$0xff] }
 0x105   :  { %v194_v22 = vsel %vm186_vm3, %v180_v14, %v190_v19  ;;  %2397 = vmatpush3.bf16.msra.mxu1 %v2394_v27  ;;  %v559_v14 = vld [vmem:[#allocation3 + $0xf8] sm:$0xff]  ;;  %516 = vst [vmem:[#allocation2] sm:$0xff] %v2792_v18  ;;  %519 = vst [vmem:[#allocation2 + $0x18] sm:$0xff] %v2792_v18 }
 0x106   :  { %v193_v21 = vsel %vm185_vm4, %v175_v16, %v189_v20  ;;  %2399 = vmatprep.subr.bf16.mxu1 %v2398_v30  ;;  %v2390_v15 = vpack.c.bf16 %v559_v14, %v558_v13  ;;  %v540_v16 = vld [vmem:[#allocation3 + $0x60] sm:$0xff]  ;;  %520 = vst [vmem:[#allocation2 + $0x20] sm:$0xff] %v2792_v18  ;;  %523 = vst [vmem:[#allocation2 + $0x38] sm:$0xff] %v2792_v18  ;;  %v542_v20 = vld [vmem:[#allocation3 + $0x70] sm:$0xff] }
 0x107   :  { %1963 = vmatprep.mubr.msk.f32.mxu1 %vm85_vm0, %v193_v21  ;;  %v2418_v19 = vpack.c.bf16 %v541_v17, %v540_v16  ;;  %v543_v21 = vld [vmem:[#allocation3 + $0x78] sm:$0xff]  ;;  %v900_v13 = vld [vmem:[#allocation3 + $0x248] sm:$0xff]  ;;  %v903_v18 = vld [vmem:[#allocation3 + $0x260] sm:$0xff] }
 0x108   :  { %1964 = vmatmul.mubr.msk.f32.gmra.mrb[6].mxu1 %vm85_vm0, %v194_v22  ;;  %v2422_v22 = vpack.c.bf16 %v543_v21, %v542_v20  ;;  %v902_v16 = vld [vmem:[#allocation3 + $0x258] sm:$0xff]  ;;  %v905_v21 = vld [vmem:[#allocation3 + $0x270] sm:$0xff] }
 0x109   :  { %2401 = vmatpush3.bf16.msra.mxu1 %v2398_v30 }
 0x10a   :  { %2403 = vmatprep.subr.bf16.mxu1 %v2402_v33 }
 0x10d   :  { %2405 = vmatpush3.bf16.msra.mxu1 %v2402_v33 }
 0x10e   :  { %2407 = vmatprep.subr.bf16.mxu1 %v2406_v36 }
 0x111   :  { %2409 = vmatpush3.bf16.msra.mxu1 %v2406_v36  ;;  %v563_v36 = vld [vmem:[#allocation3 + $0x118] sm:$0xff] }
 0x112   :  { %2411 = vmatprep.subr.bf16.mxu1 %v2410_v39 }
 0x115   :  { %2413 = vmatpush3.bf16.msra.mxu1 %v2410_v39  ;;  %v2430_v39 = vpack.c.bf16 %v563_v36, %v562_v35  ;;  %v1245_v36 = vld [vmem:[#allocation3 + $0x3b0] sm:$0xff] }
 0x116   :  { %2415 = vmatprep.subr.bf16.mxu1 %v2414_v12 }
 0x119   :  { %2417 = vmatpush3.bf16.msra.mxu1 %v2414_v12  ;;  %v899_v12 = vld [vmem:[#allocation3 + $0x240] sm:$0xff] }
 0x11a   :  { %2419 = vmatprep.subr.bf16.mxu1 %v2418_v19  ;;  %v2474_v14 = vpack.c.bf16 %v900_v13, %v899_v12  ;;  %v883_v13 = vld [vmem:[#allocation3 + $0x1c0] sm:$0xff] }
 0x11d   :  { %2421 = vmatpush3.bf16.msra.mxu1 %v2418_v19  ;;  %v904_v19 = vld [vmem:[#allocation3 + $0x268] sm:$0xff] }
 0x11e   :  { %2423 = vmatprep.subr.bf16.mxu1 %v2422_v22  ;;  %v2482_v20 = vpack.c.bf16 %v904_v19, %v903_v18  ;;  %v887_v19 = vld [vmem:[#allocation3 + $0x1e0] sm:$0xff] }
 0x121   :  { %2425 = vmatpush3.bf16.msra.mxu1 %v2422_v22  ;;  %v906_v22 = vld [vmem:[#allocation3 + $0x278] sm:$0xff] }
 0x1d7   :  { %v1962_v41 = vpop.f32.mrb[4].mxu1 }
 0x1d8   :  { %v281_v44 = vpop.f32.mrb[5].mxu1  ;;  %v287_v46 = vadd.f32 %v1962_v41, %v1709_v40  ;;  %v565_v41 = vld [vmem:[#allocation3 + $0x128] sm:$0xff] }
 0x1d9   :  { %v282_v45 = vadd.f32 %v1709_v40, %v281_v44 }
 0x1db   :  { %v1965_v48 = vpop.f32.mrb[6].mxu1  ;;  %1968 = vmatprep.mubr.msk.f32.mxu0 %vm85_vm0, %v282_v45  ;;  %v566_v45 = vld [vmem:[#allocation3 + $0x130] sm:$0xff] }
 0x1dc   :  { %v291_v49 = vpop.f32.mrb[7].mxu1  ;;  %1969 = vmatmul.mubr.msk.f32.vlgmr.msra.gmra.mrb[0].mxu0 %vm85_vm0, %v287_v46  ;;  %v297_v51 = vadd.f32 %v1965_v48, %v1709_v40  ;;  %v567_v46 = vld [vmem:[#allocation3 + $0x138] sm:$0xff] }
 0x1dd   :  { %v292_v50 = vadd.f32 %v1709_v40, %v291_v49  ;;  %1975 = vmatpush3.msk.msra.mxu0 %vm416_vm5, %v304_v24  ;;  %v561_v24 = vld [vmem:[#allocation3 + $0x108] sm:$0xff]  ;;  %v564_v40 = vld [vmem:[#allocation3 + $0x120] sm:$0xff]  ;;  %v2438_v48 = vpack.c.bf16 %v567_v46, %v566_v45 }
 0x1de   :  { %2363 = vmatprep.subr.bf16.mxu0 %v2362_v47  ;;  %v2426_v25 = vpack.c.bf16 %v561_v24, %v560_v23  ;;  %v2434_v44 = vpack.c.bf16 %v565_v41, %v564_v40  ;;  %v568_v49 = vld [vmem:[#allocation3 + $0x140] sm:$0xff]  ;;  %v2486_v23 = vpack.c.bf16 %v906_v22, %v905_v21  ;;  %v1248_v41 = vld [vmem:[#allocation3 + $0x3c8] sm:$0xff]  ;;  %v889_v22 = vld [vmem:[#allocation3 + $0x1f0] sm:$0xff] }
 0x1df   :  { %1971 = vmatprep.mubr.msk.f32.mxu0 %vm85_vm0, %v292_v50  ;;  %v569_v50 = vld [vmem:[#allocation3 + $0x148] sm:$0xff]  ;;  %v875_v24 = vld [vmem:[#allocation3 + $0x180] sm:$0xff] }
 0x1e0   :  { %1972 = vmatmul.mubr.msk.f32.gmra.mrb[2].mxu0 %vm85_vm0, %v297_v51  ;;  %2427 = vmatprep.subr.bf16.mxu1 %v2426_v25  ;;  %v2442_v51 = vpack.c.bf16 %v569_v50, %v568_v49  ;;  %v1247_v40 = vld [vmem:[#allocation3 + $0x3c0] sm:$0xff] }
 0x1e1   :  { %1976 = vmatprep.mubr.msk.f32.mxu0 %vm403_vm6, %v300_v52  ;;  %v570_v52 = vld [vmem:[#allocation3 + $0x150] sm:$0xff]  ;;  %v1724_v46 = vld [vmem:[%s2998_s10] ss:$0 sm:$0xff] }
 0x1e2   :  { %v2446_v54 = vpack.c.bf16 %v571_v53, %v570_v52 }
 0x1e4   :  { %1977 = vmatmul.mubr.msk.f32.vlgmr.msra.gmra.mrb[0].mxu0 %vm403_vm6, %v301_v55  ;;  %v572_v55 = vld [vmem:[#allocation3 + $0x160] sm:$0xff] }
 0x1e5   :  { %1979 = vmatprep.mubr.msk.f32.mxu0 %vm403_vm6, %v302_v56  ;;  %2365 = vmatpush3.bf16.msra.mxu0 %v2362_v47  ;;  %v573_v56 = vld [vmem:[#allocation3 + $0x168] sm:$0xff] }
 0x1e6   :  { %2367 = vmatprep.subr.bf16.mxu0 %v2366_v57 }
 0x1e8   :  { %1980 = vmatmul.mubr.msk.f32.gmra.mrb[2].mxu0 %vm403_vm6, %v303_v60  ;;  %v2454_v60 = vpack.c.bf16 %v575_v59, %v574_v58  ;;  %v878_v58 = vld [vmem:[#allocation3 + $0x198] sm:$0xff] }
 0x1e9   :  { %2369 = vmatpush3.bf16.msra.mxu0 %v2366_v57  ;;  %v2450_v57 = vpack.c.bf16 %v573_v56, %v572_v55 }
 0x1ea   :  { %2371 = vmatprep.subr.bf16.mxu0 %v2370_v61 }
 0x1ed   :  { %2373 = vmatpush3.bf16.msra.mxu0 %v2370_v61 }
 0x1ee   :  { %2375 = vmatprep.subr.bf16.mxu0 %v2374_v0 }
 0x1f1   :  { %2377 = vmatpush3.bf16.msra.mxu0 %v2374_v0  ;;  %v891_v0 = vld [vmem:[#allocation3 + $0x200] sm:$0xff] }
 0x1f2   :  { %2379 = vmatprep.subr.bf16.mxu0 %v2378_v3 }
 0x1f5   :  { %2381 = vmatpush3.bf16.msra.mxu0 %v2378_v3  ;;  %v2458_v3 = vpack.c.bf16 %v892_v1, %v891_v0 }
 0x1f6   :  { %2383 = vmatprep.subr.bf16.mxu0 %v2382_v6 }
 0x1f9   :  { %2385 = vmatpush3.bf16.msra.mxu0 %v2382_v6  ;;  %v895_v6 = vld [vmem:[#allocation3 + $0x220] sm:$0xff] }
 0x1fa   :  { %2387 = vmatprep.subr.bf16.mxu0 %v2386_v9  ;;  %v2466_v8 = vpack.c.bf16 %v896_v7, %v895_v6 }
 0x1fd   :  { %2389 = vmatpush3.bf16.msra.mxu0 %v2386_v9  ;;  %v897_v9 = vld [vmem:[#allocation3 + $0x230] sm:$0xff] }
 0x1fe   :  { %2391 = vmatprep.subr.bf16.mxu0 %v2390_v15  ;;  %v2470_v11 = vpack.c.bf16 %v898_v10, %v897_v9  ;;  %v881_v9 = vld [vmem:[#allocation3 + $0x1b0] sm:$0xff]  ;;  %v882_v10 = vld [vmem:[#allocation3 + $0x1b8] sm:$0xff] }
 0x1ff   :  { %v2502_v12 = vpack.c.bf16 %v882_v10, %v881_v9  ;;  %v1578_v10 = vld [vmem:[#allocation6 + $0x20] sm:$0xff] }
 0x201   :  { %2393 = vmatpush3.bf16.msra.mxu0 %v2390_v15  ;;  %v901_v15 = vld [vmem:[#allocation3 + $0x250] sm:$0xff] }
 0x202   :  { %2459 = vmatprep.subr.bf16.mxu0 %v2458_v3  ;;  %v2478_v17 = vpack.c.bf16 %v902_v16, %v901_v15  ;;  %v885_v16 = vld [vmem:[#allocation3 + $0x1d0] sm:$0xff] }
 0x2b7   :  { %v1978_v27 = vpop.f32.mrb[0].mxu0 }
 0x2b8   :  { %v513_v28 = vadd.f32 %v1978_v27, %v1723_v26  ;;  %v486_v29 = vpop.f32.mrb[1].mxu0  ;;  %v1239_v27 = vld [vmem:[#allocation3 + $0x380] sm:$0xff] }
 0x2b9   :  { %v512_v30 = vadd.f32 %v1723_v26, %v486_v29  ;;  %v1241_v29 = vld [vmem:[#allocation3 + $0x390] sm:$0xff] }
 0x2ba   :  { %525 = vst [vmem:[#allocation2 + $0x10] sm:$0xff] %v513_v28 }
 0x2bb   :  { %524 = vst [vmem:[#allocation2 + $0x8] sm:$0xff] %v512_v30  ;;  %v1981_v31 = vpop.f32.mrb[2].mxu0  ;;  %2014 = vmatprep.mubr.f32.mxu0 %v512_v30 }
 0x2bc   :  { %v515_v32 = vadd.f32 %v1981_v31, %v1723_v26  ;;  %v496_v33 = vpop.f32.mrb[3].mxu0  ;;  %2015 = vmatmul.mubr.f32.vlgmr.msra.gmra.mrb[4].mxu0 %v513_v28  ;;  %v1240_v28 = vld [vmem:[#allocation3 + $0x388] sm:$0xff]  ;;  %v1242_v31 = vld [vmem:[#allocation3 + $0x398] sm:$0xff] }
 0x2bd   :  { %v514_v34 = vadd.f32 %v1723_v26, %v496_v33  ;;  %2461 = vmatpush3.bf16.msra.mxu0 %v2458_v3  ;;  %v2554_v30 = vpack.c.bf16 %v1240_v28, %v1239_v27  ;;  %v1243_v33 = vld [vmem:[#allocation3 + $0x3a0] sm:$0xff]  ;;  %v909_v28 = vld [vmem:[#allocation3 + $0x290] sm:$0xff] }
 0x2be   :  { %527 = vst [vmem:[#allocation2 + $0x30] sm:$0xff] %v515_v32  ;;  %2463 = vmatprep.subr.bf16.mxu0 %v2462_v5  ;;  %v879_v3 = vld [vmem:[#allocation3 + $0x1a0] sm:$0xff] }
 0x2bf   :  { %526 = vst [vmem:[#allocation2 + $0x28] sm:$0xff] %v514_v34  ;;  %2017 = vmatprep.mubr.f32.mxu0 %v514_v34  ;;  %v1244_v34 = vld [vmem:[#allocation3 + $0x3a8] sm:$0xff] }
 0x2c0   :  { %2018 = vmatmul.mubr.f32.gmra.mrb[6].mxu0 %v515_v32  ;;  %v2558_v32 = vpack.c.bf16 %v1242_v31, %v1241_v29  ;;  %v2562_v35 = vpack.c.bf16 %v1244_v34, %v1243_v33  ;;  %v910_v29 = vld [vmem:[#allocation3 + $0x298] sm:$0xff]  ;;  %v912_v33 = vld [vmem:[#allocation3 + $0x2a8] sm:$0xff] }
 0x2c1   :  { %v756_v61 = vld [vmem:[#allocation2 + $0x11] sm:$0xff]  ;;  %2465 = vmatpush3.bf16.msra.mxu0 %v2462_v5 }
 0x2c2   :  { %v577_v37 = vld [vmem:[#allocation2 + $0x7] sm:$0xff]  ;;  %v578_v38 = vld [vmem:[#allocation2 + $0xf] sm:$0xff]  ;;  %2467 = vmatprep.subr.bf16.mxu0 %v2466_v8 }
 0x2c3   :  { %2052 = vmatprep.mubr.f32.mxu1 %v577_v37  ;;  %v755_v47 = vld [vmem:[#allocation2 + $0x9] sm:$0xff]  ;;  %v1246_v37 = vld [vmem:[#allocation3 + $0x3b8] sm:$0xff] }
 0x2c4   :  { %2053 = vmatmul.mubr.f32.vlgmr.msra.gmra.mrb[8].mxu1 %v578_v38  ;;  %v2566_v38 = vpack.c.bf16 %v1246_v37, %v1245_v36  ;;  %v913_v37 = vld [vmem:[#allocation3 + $0x2b0] sm:$0xff] }
 0x2c5   :  { %2429 = vmatpush3.bf16.msra.mxu1 %v2426_v25  ;;  %v758_v63 = vld [vmem:[#allocation2 + $0x31] sm:$0xff]  ;;  %2469 = vmatpush3.bf16.msra.mxu0 %v2466_v8  ;;  %v876_v25 = vld [vmem:[#allocation3 + $0x188] sm:$0xff]  ;;  %v2498_v8 = vpack.c.bf16 %v880_v4, %v879_v3  ;;  %v1574_v4 = vld [vmem:[#allocation6] sm:$0xff] }
 0x2c6   :  { %v579_v42 = vld [vmem:[#allocation2 + $0x27] sm:$0xff]  ;;  %2431 = vmatprep.subr.bf16.mxu1 %v2430_v39  ;;  %v580_v43 = vld [vmem:[#allocation2 + $0x2f] sm:$0xff]  ;;  %2471 = vmatprep.subr.bf16.mxu0 %v2470_v11  ;;  %v2957_v26 = vpack.c.bf16 %v876_v25, %v875_v24 }
 0x2c7   :  { %2055 = vmatprep.mubr.f32.mxu1 %v579_v42  ;;  %v757_v62 = vld [vmem:[#allocation2 + $0x29] sm:$0xff]  ;;  %v907_v25 = vld [vmem:[#allocation3 + $0x280] sm:$0xff] }
 0x2c8   :  { %2056 = vmatmul.mubr.f32.gmra.mrb[10].mxu1 %v580_v43  ;;  %v2570_v43 = vpack.c.bf16 %v1248_v41, %v1247_v40  ;;  %v915_v41 = vld [vmem:[#allocation3 + $0x2c0] sm:$0xff] }
 0x2c9   :  { %2433 = vmatpush3.bf16.msra.mxu1 %v2430_v39  ;;  %2090 = vmatprep.mubr.f32.mxu1 %v755_v47 }
 0x2ca   :  { %2435 = vmatprep.subr.bf16.mxu1 %v2434_v44  ;;  %2473 = vmatpush3.bf16.msra.mxu0 %v2470_v11 }
 0x2cb   :  { %2475 = vmatprep.subr.bf16.mxu0 %v2474_v14 }
 0x2cd   :  { %2437 = vmatpush3.bf16.msra.mxu1 %v2434_v44 }
 0x2ce   :  { %2439 = vmatprep.subr.bf16.mxu1 %v2438_v48  ;;  %2477 = vmatpush3.bf16.msra.mxu0 %v2474_v14  ;;  %v884_v14 = vld [vmem:[#allocation3 + $0x1c8] sm:$0xff] }
 0x2cf   :  { %2479 = vmatprep.subr.bf16.mxu0 %v2478_v17  ;;  %v2506_v15 = vpack.c.bf16 %v884_v14, %v883_v13  ;;  %v1580_v13 = vld [vmem:[#allocation6 + $0x30] sm:$0xff]  ;;  %v1581_v14 = vld [vmem:[#allocation6 + $0x38] sm:$0xff] }
 0x2d1   :  { %2441 = vmatpush3.bf16.msra.mxu1 %v2438_v48 }
 0x2d2   :  { %2443 = vmatprep.subr.bf16.mxu1 %v2442_v51  ;;  %2481 = vmatpush3.bf16.msra.mxu0 %v2478_v17  ;;  %v886_v17 = vld [vmem:[#allocation3 + $0x1d8] sm:$0xff] }
 0x2d3   :  { %2483 = vmatprep.subr.bf16.mxu0 %v2482_v20  ;;  %v2510_v18 = vpack.c.bf16 %v886_v17, %v885_v16  ;;  %v1726_v16 = vld [vmem:[%s2998_s10 + $0x1] ss:$0 sm:$0xff] }
 0x2d5   :  { %2445 = vmatpush3.bf16.msra.mxu1 %v2442_v51 }
 0x2d6   :  { %2447 = vmatprep.subr.bf16.mxu1 %v2446_v54  ;;  %2485 = vmatpush3.bf16.msra.mxu0 %v2482_v20  ;;  %v888_v20 = vld [vmem:[#allocation3 + $0x1e8] sm:$0xff] }
 0x2d7   :  { %2487 = vmatprep.subr.bf16.mxu0 %v2486_v23  ;;  %v2514_v21 = vpack.c.bf16 %v888_v20, %v887_v19 }
 0x2d9   :  { %2449 = vmatpush3.bf16.msra.mxu1 %v2446_v54 }
 0x2da   :  { %2451 = vmatprep.subr.bf16.mxu1 %v2450_v57  ;;  %2489 = vmatpush3.bf16.msra.mxu0 %v2486_v23  ;;  %v890_v23 = vld [vmem:[#allocation3 + $0x1f8] sm:$0xff] }
 0x2db   :  { %2491 = vmatprep.subr.bf16.mxu0 %v2957_v26  ;;  %v2518_v24 = vpack.c.bf16 %v890_v23, %v889_v22  ;;  %v1225_v22 = vld [vmem:[#allocation3 + $0x310] sm:$0xff]  ;;  %v1226_v23 = vld [vmem:[#allocation3 + $0x318] sm:$0xff] }
 0x2dd   :  { %2453 = vmatpush3.bf16.msra.mxu1 %v2450_v57  ;;  %v877_v57 = vld [vmem:[#allocation3 + $0x190] sm:$0xff] }
 0x2de   :  { %2455 = vmatprep.subr.bf16.mxu1 %v2454_v60  ;;  %v2494_v1 = vpack.c.bf16 %v878_v58, %v877_v57  ;;  %v1250_v57 = vld [vmem:[#allocation3 + $0x3d8] sm:$0xff] }
 0x2e1   :  { %2457 = vmatpush3.bf16.msra.mxu1 %v2454_v60 }
 0x2e2   :  { %2555 = vmatprep.subr.bf16.mxu1 %v2554_v30 }
 0x2e4   :  { %2091 = vmatmul.mubr.f32.vlgmr.msra.gmra.mrb[8].mxu1 %v756_v61 }
 0x2e5   :  { %2093 = vmatprep.mubr.f32.mxu1 %v757_v62  ;;  %2557 = vmatpush3.bf16.msra.mxu1 %v2554_v30  ;;  %v2526_v30 = vpack.c.bf16 %v910_v29, %v909_v28 }
 0x2e6   :  { %2559 = vmatprep.subr.bf16.mxu1 %v2558_v32 }
 0x2e8   :  { %2094 = vmatmul.mubr.f32.gmra.mrb[10].mxu1 %v758_v63 }
 0x2e9   :  { %2561 = vmatpush3.bf16.msra.mxu1 %v2558_v32  ;;  %v911_v32 = vld [vmem:[#allocation3 + $0x2a0] sm:$0xff] }
 0x2ea   :  { %2563 = vmatprep.subr.bf16.mxu1 %v2562_v35 }
 0x2ed   :  { %2565 = vmatpush3.bf16.msra.mxu1 %v2562_v35  ;;  %v2530_v35 = vpack.c.bf16 %v912_v33, %v911_v32  ;;  %v1227_v33 = vld [vmem:[#allocation3 + $0x320] sm:$0xff] }
 0x2ee   :  { %2567 = vmatprep.subr.bf16.mxu1 %v2566_v38 }
 0x2f1   :  { %2569 = vmatpush3.bf16.msra.mxu1 %v2566_v38  ;;  %v914_v38 = vld [vmem:[#allocation3 + $0x2b8] sm:$0xff] }
 0x2f2   :  { %2571 = vmatprep.subr.bf16.mxu1 %v2570_v43  ;;  %v2534_v40 = vpack.c.bf16 %v914_v38, %v913_v37 }
 0x2f5   :  { %2573 = vmatpush3.bf16.msra.mxu1 %v2570_v43 }
 0x38f   :  { %v2016_v39 = vpop.f32.mrb[4].mxu0 }
 0x390   :  { %v651_v42 = vpop.f32.mrb[5].mxu0 }
 0x393   :  { %v2019_v44 = vpop.f32.mrb[6].mxu0 }
 0x394   :  { %v661_v45 = vpop.f32.mrb[7].mxu0 }
 0x3b7   :  { %v2092_v47 = vpop.f32.mrb[8].mxu1 }
 0x3b8   :  { %v2682_v48 = vadd.f32 %v2092_v47, %v2016_v39  ;;  %v825_v49 = vpop.f32.mrb[9].mxu1  ;;  %v919_v47 = vld [vmem:[#allocation3 + $0x2e0] sm:$0xff] }
 0x3b9   :  { %v2683_v50 = vadd.f32 %v825_v49, %v651_v42  ;;  %v916_v42 = vld [vmem:[#allocation3 + $0x2c8] sm:$0xff] }
 0x3ba   :  { %v855_v51 = vadd.f32 %v2682_v48, %v1724_v46  ;;  %v2538_v43 = vpack.c.bf16 %v916_v42, %v915_v41  ;;  %v920_v48 = vld [vmem:[#allocation3 + $0x2e8] sm:$0xff] }
 0x3bb   :  { %v854_v52 = vadd.f32 %v2683_v50, %v1724_v46  ;;  %v2095_v53 = vpop.f32.mrb[10].mxu1  ;;  %v2546_v49 = vpack.c.bf16 %v920_v48, %v919_v47  ;;  %v921_v50 = vld [vmem:[#allocation3 + $0x2f0] sm:$0xff]  ;;  %v1234_v47 = vld [vmem:[#allocation3 + $0x358] sm:$0xff] }
 0x3bc   :  { %vm859_vm7 = vcmp.gt.f32.partialorder %v855_v51, 0.0  ;;  %v863_v54 = vmul.f32 0.2, %v855_v51  ;;  %v2684_v55 = vadd.f32 %v2095_v53, %v2019_v44  ;;  %v835_v56 = vpop.f32.mrb[11].mxu1  ;;  %v917_v44 = vld [vmem:[#allocation3 + $0x2d0] sm:$0xff] }
 0x3bd   :  { %vm858_vm8 = vcmp.gt.f32.partialorder %v854_v52, 0.0  ;;  %v862_v59 = vmul.f32 0.2, %v854_v52  ;;  %v2685_v60 = vadd.f32 %v835_v56, %v661_v45  ;;  %v918_v45 = vld [vmem:[#allocation3 + $0x2d8] sm:$0xff]  ;;  %v1249_v56 = vld [vmem:[#allocation3 + $0x3d0] sm:$0xff] }
 0x3be   :  { %v867_v61 = vsel %vm859_vm7, %v855_v51, %v863_v54  ;;  %v857_v62 = vadd.f32 %v2684_v55, %v1724_v46  ;;  %v922_v51 = vld [vmem:[#allocation3 + $0x2f8] sm:$0xff]  ;;  %v2574_v58 = vpack.c.bf16 %v1250_v57, %v1249_v56  ;;  %v1256_v56 = vld [vmem:[#allocation3 + $0x408] sm:$0xff] }
 0x3bf   :  { %871 = vst [vmem:[#allocation2 + $0x10] sm:$0xff] %v867_v61  ;;  %v866_v63 = vsel %vm858_vm8, %v854_v52, %v862_v59  ;;  %v856_v0 = vadd.f32 %v2685_v60, %v1724_v46  ;;  %v2542_v46 = vpack.c.bf16 %v918_v45, %v917_v44  ;;  %v2550_v52 = vpack.c.bf16 %v922_v51, %v921_v50  ;;  %v1251_v59 = vld [vmem:[#allocation3 + $0x3e0] sm:$0xff]  ;;  %v1252_v60 = vld [vmem:[#allocation3 + $0x3e8] sm:$0xff] }
 0x3c0   :  { %870 = vst [vmem:[#allocation2 + $0x8] sm:$0xff] %v866_v63  ;;  %vm861_vm9 = vcmp.gt.f32.partialorder %v857_v62, 0.0  ;;  %v865_v2 = vmul.f32 0.2, %v857_v62  ;;  %2128 = vmatprep.mubr.f32.mxu0 %v866_v63  ;;  %2575 = vmatprep.subr.bf16.mxu1 %v2574_v58  ;;  %v1254_v63 = vld [vmem:[#allocation3 + $0x3f8] sm:$0xff]  ;;  %v1232_v44 = vld [vmem:[#allocation3 + $0x348] sm:$0xff] }
 0x3c1   :  { %vm860_vm10 = vcmp.gt.f32.partialorder %v856_v0, 0.0  ;;  %v864_v5 = vmul.f32 0.2, %v856_v0  ;;  %2129 = vmatmul.mubr.f32.vlgmr.msra.gmra.mrb[8].mxu0 %v867_v61  ;;  %2577 = vmatpush3.bf16.msra.mxu1 %v2574_v58  ;;  %v2578_v61 = vpack.c.bf16 %v1252_v60, %v1251_v59  ;;  %v1236_v50 = vld [vmem:[#allocation3 + $0x368] sm:$0xff]  ;;  %v1257_v58 = vld [vmem:[#allocation3 + $0x410] sm:$0xff]  ;;  %v1258_v59 = vld [vmem:[#allocation3 + $0x418] sm:$0xff] }
 0x3c2   :  { %v869_v6 = vsel %vm861_vm9, %v857_v62, %v865_v2  ;;  %2493 = vmatpush3.bf16.msra.mxu0 %v2957_v26  ;;  %v908_v26 = vld [vmem:[#allocation3 + $0x288] sm:$0xff]  ;;  %v1253_v62 = vld [vmem:[#allocation3 + $0x3f0] sm:$0xff]  ;;  %v2622_v60 = vpack.c.bf16 %v1258_v59, %v1257_v58 }
 0x3c3   :  { %873 = vst [vmem:[#allocation2 + $0x30] sm:$0xff] %v869_v6  ;;  %v868_v7 = vsel %vm860_vm10, %v856_v0, %v864_v5  ;;  %2495 = vmatprep.subr.bf16.mxu0 %v2494_v1  ;;  %v2522_v27 = vpack.c.bf16 %v908_v26, %v907_v25  ;;  %2579 = vmatprep.subr.bf16.mxu1 %v2578_v61  ;;  %v1224_v2 = vld [vmem:[#allocation3 + $0x308] sm:$0xff] }
 0x3c4   :  { %872 = vst [vmem:[#allocation2 + $0x28] sm:$0xff] %v868_v7  ;;  %2131 = vmatprep.mubr.f32.mxu0 %v868_v7  ;;  %v2582_v0 = vpack.c.bf16 %v1254_v63, %v1253_v62  ;;  %v1575_v5 = vld [vmem:[#allocation6 + $0x8] sm:$0xff]  ;;  %v1259_v62 = vld [vmem:[#allocation3 + $0x420] sm:$0xff] }
 0x3c5   :  { %2132 = vmatmul.mubr.f32.gmra.mrb[10].mxu0 %v869_v6  ;;  %2581 = vmatpush3.bf16.msra.mxu1 %v2578_v61  ;;  %v1576_v6 = vld [vmem:[#allocation6 + $0x10] sm:$0xff]  ;;  %v2650_v7 = vpack.c.bf16 %v1575_v5, %v1574_v4  ;;  %v1260_v63 = vld [vmem:[#allocation3 + $0x428] sm:$0xff]  ;;  %v1262_v4 = vld [vmem:[#allocation3 + $0x438] sm:$0xff] }
 0x3c6   :  { %2497 = vmatpush3.bf16.msra.mxu0 %v2494_v1  ;;  %v1104_v53 = vld [vmem:[#allocation2 + $0x12] sm:$0xff]  ;;  %2583 = vmatprep.subr.bf16.mxu1 %v2582_v0  ;;  %v1223_v1 = vld [vmem:[#allocation3 + $0x300] sm:$0xff] }
 0x3c7   :  { %v925_v11 = vld [vmem:[#allocation2 + $0x6] sm:$0xff]  ;;  %2499 = vmatprep.subr.bf16.mxu0 %v2498_v8  ;;  %v926_v31 = vld [vmem:[#allocation2 + $0xe] sm:$0xff]  ;;  %v2586_v3 = vpack.c.bf16 %v1224_v2, %v1223_v1  ;;  %v2626_v1 = vpack.c.bf16 %v1260_v63, %v1259_v62 }
 0x3c8   :  { %2166 = vmatprep.mubr.f32.mxu0 %v925_v11  ;;  %v1103_v39 = vld [vmem:[#allocation2 + $0xa] sm:$0xff] }
 0x3c9   :  { %2585 = vmatpush3.bf16.msra.mxu1 %v2582_v0  ;;  %v1579_v11 = vld [vmem:[#allocation6 + $0x28] sm:$0xff] }
 0x3ca   :  { %2501 = vmatpush3.bf16.msra.mxu0 %v2498_v8  ;;  %v1106_v55 = vld [vmem:[#allocation2 + $0x32] sm:$0xff]  ;;  %2587 = vmatprep.subr.bf16.mxu1 %v2586_v3 }
 0x3cb   :  { %2503 = vmatprep.subr.bf16.mxu0 %v2502_v12  ;;  %v927_v34 = vld [vmem:[#allocation2 + $0x26] sm:$0xff]  ;;  %v928_v36 = vld [vmem:[#allocation2 + $0x2e] sm:$0xff]  ;;  %v1577_v8 = vld [vmem:[#allocation6 + $0x18] sm:$0xff] }
 0x3cc   :  { %v1105_v54 = vld [vmem:[#allocation2 + $0x2a] sm:$0xff]  ;;  %v2654_v9 = vpack.c.bf16 %v1577_v8, %v1576_v6  ;;  %v1263_v6 = vld [vmem:[#allocation3 + $0x440] sm:$0xff] }
 0x3ce   :  { %2505 = vmatpush3.bf16.msra.mxu0 %v2502_v12  ;;  %v2658_v12 = vpack.c.bf16 %v1579_v11, %v1578_v10  ;;  %v1266_v10 = vld [vmem:[#allocation3 + $0x458] sm:$0xff] }
 0x3cf   :  { %2507 = vmatprep.subr.bf16.mxu0 %v2506_v15 }
 0x3d2   :  { %2509 = vmatpush3.bf16.msra.mxu0 %v2506_v15  ;;  %v2662_v15 = vpack.c.bf16 %v1581_v14, %v1580_v13  ;;  %v1268_v13 = vld [vmem:[#allocation3 + $0x468] sm:$0xff] }
 0x3d3   :  { %2511 = vmatprep.subr.bf16.mxu0 %v2510_v18 }
 0x3d6   :  { %2513 = vmatpush3.bf16.msra.mxu0 %v2510_v18 }
 0x3d7   :  { %2515 = vmatprep.subr.bf16.mxu0 %v2514_v21 }
 0x3da   :  { %2517 = vmatpush3.bf16.msra.mxu0 %v2514_v21 }
 0x3db   :  { %2519 = vmatprep.subr.bf16.mxu0 %v2518_v24 }
 0x3de   :  { %2521 = vmatpush3.bf16.msra.mxu0 %v2518_v24 }
 0x3df   :  { %2523 = vmatprep.subr.bf16.mxu0 %v2522_v27 }
 0x3e1   :  { %2167 = vmatmul.mubr.f32.vlgmr.msra.gmra.mrb[8].mxu0 %v926_v31  ;;  %v2590_v31 = vpack.c.bf16 %v1226_v23, %v1225_v22  ;;  %v1584_v23 = vld [vmem:[#allocation6 + $0x50] sm:$0xff] }
 0x3e2   :  { %2169 = vmatprep.mubr.f32.mxu0 %v927_v34  ;;  %2525 = vmatpush3.bf16.msra.mxu0 %v2522_v27  ;;  %v1228_v34 = vld [vmem:[#allocation3 + $0x328] sm:$0xff] }
 0x3e3   :  { %2527 = vmatprep.subr.bf16.mxu0 %v2526_v30  ;;  %v2594_v38 = vpack.c.bf16 %v1228_v34, %v1227_v33 }
 0x3e5   :  { %2170 = vmatmul.mubr.f32.gmra.mrb[10].mxu0 %v928_v36 }
 0x3e6   :  { %2529 = vmatpush3.bf16.msra.mxu0 %v2526_v30  ;;  %2204 = vmatprep.mubr.f32.mxu0 %v1103_v39  ;;  %v1229_v39 = vld [vmem:[#allocation3 + $0x330] sm:$0xff] }
 0x3e7   :  { %2531 = vmatprep.subr.bf16.mxu0 %v2530_v35 }
 0x3ea   :  { %2533 = vmatpush3.bf16.msra.mxu0 %v2530_v35 }
 0x3eb   :  { %2535 = vmatprep.subr.bf16.mxu0 %v2534_v40 }
 0x3ee   :  { %2537 = vmatpush3.bf16.msra.mxu0 %v2534_v40  ;;  %v1230_v40 = vld [vmem:[#allocation3 + $0x338] sm:$0xff] }
 0x3ef   :  { %2539 = vmatprep.subr.bf16.mxu0 %v2538_v43  ;;  %v2598_v42 = vpack.c.bf16 %v1230_v40, %v1229_v39 }
 0x3f2   :  { %2541 = vmatpush3.bf16.msra.mxu0 %v2538_v43  ;;  %v1231_v43 = vld [vmem:[#allocation3 + $0x340] sm:$0xff] }
 0x3f3   :  { %2543 = vmatprep.subr.bf16.mxu0 %v2542_v46  ;;  %v2602_v45 = vpack.c.bf16 %v1232_v44, %v1231_v43 }
 0x3f6   :  { %2545 = vmatpush3.bf16.msra.mxu0 %v2542_v46  ;;  %v1233_v46 = vld [vmem:[#allocation3 + $0x350] sm:$0xff] }
 0x3f7   :  { %2547 = vmatprep.subr.bf16.mxu0 %v2546_v49  ;;  %v2606_v48 = vpack.c.bf16 %v1234_v47, %v1233_v46 }
 0x3fa   :  { %2549 = vmatpush3.bf16.msra.mxu0 %v2546_v49  ;;  %v1235_v49 = vld [vmem:[#allocation3 + $0x360] sm:$0xff] }
 0x3fb   :  { %2551 = vmatprep.subr.bf16.mxu0 %v2550_v52  ;;  %v2610_v51 = vpack.c.bf16 %v1236_v50, %v1235_v49  ;;  %v1729_v49 = vld [vmem:[%s3000_s12] ss:$0 sm:$0xff] }
 0x3fe   :  { %2553 = vmatpush3.bf16.msra.mxu0 %v2550_v52  ;;  %v1237_v52 = vld [vmem:[#allocation3 + $0x370] sm:$0xff] }
 0x3ff   :  { %2651 = vmatprep.subr.bf16.mxu0 %v2650_v7 }
 0x401   :  { %2205 = vmatmul.mubr.f32.vlgmr.msra.gmra.mrb[8].mxu0 %v1104_v53  ;;  %v1238_v53 = vld [vmem:[#allocation3 + $0x378] sm:$0xff] }
 0x402   :  { %2207 = vmatprep.mubr.f32.mxu0 %v1105_v54  ;;  %2653 = vmatpush3.bf16.msra.mxu0 %v2650_v7  ;;  %v2614_v54 = vpack.c.bf16 %v1238_v53, %v1237_v52  ;;  %v1264_v7 = vld [vmem:[#allocation3 + $0x448] sm:$0xff] }
 0x403   :  { %2655 = vmatprep.subr.bf16.mxu0 %v2654_v9  ;;  %v2634_v8 = vpack.c.bf16 %v1264_v7, %v1263_v6 }
 0x405   :  { %2208 = vmatmul.mubr.f32.gmra.mrb[10].mxu0 %v1106_v55  ;;  %v1255_v55 = vld [vmem:[#allocation3 + $0x400] sm:$0xff] }
 0x406   :  { %2657 = vmatpush3.bf16.msra.mxu0 %v2654_v9  ;;  %v2618_v57 = vpack.c.bf16 %v1256_v56, %v1255_v55  ;;  %v1265_v9 = vld [vmem:[#allocation3 + $0x450] sm:$0xff] }
 0x407   :  { %2659 = vmatprep.subr.bf16.mxu0 %v2658_v12  ;;  %v2638_v11 = vpack.c.bf16 %v1266_v10, %v1265_v9 }
 0x40a   :  { %2661 = vmatpush3.bf16.msra.mxu0 %v2658_v12  ;;  %v1267_v12 = vld [vmem:[#allocation3 + $0x460] sm:$0xff] }
 0x40b   :  { %2663 = vmatprep.subr.bf16.mxu0 %v2662_v15  ;;  %v2642_v14 = vpack.c.bf16 %v1268_v13, %v1267_v12 }
 0x40e   :  { %2665 = vmatpush3.bf16.msra.mxu0 %v2662_v15  ;;  %v1269_v15 = vld [vmem:[#allocation3 + $0x470] sm:$0xff] }
 0x4d4   :  { %v2206_v17 = vpop.f32.mrb[8].mxu0 }
 0x4d5   :  { %v1203_v18 = vadd.f32 %v2206_v17, %v1726_v16  ;;  %v1173_v19 = vpop.f32.mrb[9].mxu0 }
 0x4d6   :  { %v1202_v20 = vadd.f32 %v1726_v16, %v1173_v19 }
 0x4d7   :  { %vm1207_vm11 = vcmp.gt.f32.partialorder %v1203_v18, 0.0  ;;  %v1211_v21 = vmul.f32 0.2, %v1203_v18 }
 0x4d8   :  { %vm1206_vm12 = vcmp.gt.f32.partialorder %v1202_v20, 0.0  ;;  %v1210_v24 = vmul.f32 0.2, %v1202_v20  ;;  %v2209_v25 = vpop.f32.mrb[10].mxu0 }
 0x4d9   :  { %v1215_v26 = vsel %vm1207_vm11, %v1203_v18, %v1211_v21  ;;  %v1205_v27 = vadd.f32 %v2209_v25, %v1726_v16  ;;  %v1183_v28 = vpop.f32.mrb[11].mxu0  ;;  %v1583_v21 = vld [vmem:[#allocation6 + $0x48] sm:$0xff] }
 0x4da   :  { %1219 = vst [vmem:[#allocation2 + $0x10] sm:$0xff] %v1215_v26  ;;  %v1214_v29 = vsel %vm1206_vm12, %v1202_v20, %v1210_v24  ;;  %v1204_v30 = vadd.f32 %v1726_v16, %v1183_v28  ;;  %v1270_v16 = vld [vmem:[#allocation3 + $0x478] sm:$0xff]  ;;  %v1582_v20 = vld [vmem:[#allocation6 + $0x40] sm:$0xff] }
 0x4db   :  { %1218 = vst [vmem:[#allocation2 + $0x8] sm:$0xff] %v1214_v29  ;;  %vm1209_vm13 = vcmp.gt.f32.partialorder %v1205_v27, 0.0  ;;  %v1213_v32 = vmul.f32 0.2, %v1205_v27  ;;  %2242 = vmatprep.mubr.f32.mxu1 %v1214_v29  ;;  %v2646_v17 = vpack.c.bf16 %v1270_v16, %v1269_v15  ;;  %v2666_v22 = vpack.c.bf16 %v1583_v21, %v1582_v20  ;;  %v1585_v24 = vld [vmem:[#allocation6 + $0x58] sm:$0xff]  ;;  %v1588_v29 = vld [vmem:[#allocation6 + $0x70] sm:$0xff] }
 0x4dc   :  { %vm1208_vm14 = vcmp.gt.f32.partialorder %v1204_v30, 0.0  ;;  %v1212_v35 = vmul.f32 0.2, %v1204_v30  ;;  %2243 = vmatmul.mubr.f32.vlgmr.msra.gmra.mrb[12].mxu1 %v1215_v26  ;;  %v2670_v25 = vpack.c.bf16 %v1585_v24, %v1584_v23  ;;  %v1586_v26 = vld [vmem:[#allocation6 + $0x60] sm:$0xff] }
 0x4dd   :  { %v1217_v36 = vsel %vm1209_vm13, %v1205_v27, %v1213_v32  ;;  %2589 = vmatpush3.bf16.msra.mxu1 %v2586_v3  ;;  %v1261_v3 = vld [vmem:[#allocation3 + $0x430] sm:$0xff]  ;;  %2667 = vmatprep.subr.bf16.mxu0 %v2666_v22  ;;  %v1587_v27 = vld [vmem:[#allocation6 + $0x68] sm:$0xff]  ;;  %v1728_v32 = vld [vmem:[%s2998_s10 + $0x2] ss:$0 sm:$0xff] }
 0x4de   :  { %1221 = vst [vmem:[#allocation2 + $0x30] sm:$0xff] %v1217_v36  ;;  %v1216_v37 = vsel %vm1208_vm14, %v1204_v30, %v1212_v35  ;;  %2591 = vmatprep.subr.bf16.mxu1 %v2590_v31  ;;  %v2630_v5 = vpack.c.bf16 %v1262_v4, %v1261_v3  ;;  %2669 = vmatpush3.bf16.msra.mxu0 %v2666_v22  ;;  %v1589_v30 = vld [vmem:[#allocation6 + $0x78] sm:$0xff] }
 0x4df   :  { %1220 = vst [vmem:[#allocation2 + $0x28] sm:$0xff] %v1216_v37  ;;  %2245 = vmatprep.mubr.f32.mxu1 %v1216_v37  ;;  %2671 = vmatprep.subr.bf16.mxu0 %v2670_v25  ;;  %v2674_v28 = vpack.c.bf16 %v1587_v27, %v1586_v26 }
 0x4e0   :  { %2246 = vmatmul.mubr.f32.gmra.mrb[14].mxu1 %v1217_v36 }
 0x4e1   :  { %2593 = vmatpush3.bf16.msra.mxu1 %v2590_v31  ;;  %v1452_v18 = vld [vmem:[#allocation2 + $0x14] sm:$0xff]  ;;  %v2678_v31 = vpack.c.bf16 %v1589_v30, %v1588_v29 }
 0x4e2   :  { %v1273_v41 = vld [vmem:[#allocation2 + $0x4] sm:$0xff]  ;;  %2595 = vmatprep.subr.bf16.mxu1 %v2594_v38  ;;  %v1274_v61 = vld [vmem:[#allocation2 + $0xc] sm:$0xff]  ;;  %2673 = vmatpush3.bf16.msra.mxu0 %v2670_v25 }
 0x4e3   :  { %2280 = vmatprep.mubr.f32.mxu1 %v1273_v41  ;;  %2675 = vmatprep.subr.bf16.mxu0 %v2674_v28 }
 0x4e5   :  { %2597 = vmatpush3.bf16.msra.mxu1 %v2594_v38  ;;  %v1454_v19 = vld [vmem:[#allocation2 + $0x34] sm:$0xff] }
 0x4e6   :  { %2599 = vmatprep.subr.bf16.mxu1 %v2598_v42  ;;  %v1275_v0 = vld [vmem:[#allocation2 + $0x24] sm:$0xff]  ;;  %v1276_v2 = vld [vmem:[#allocation2 + $0x2c] sm:$0xff]  ;;  %2677 = vmatpush3.bf16.msra.mxu0 %v2674_v28 }
 0x4e7   :  { %2679 = vmatprep.subr.bf16.mxu0 %v2678_v31 }
 0x4e9   :  { %2601 = vmatpush3.bf16.msra.mxu1 %v2598_v42 }
 0x4ea   :  { %2603 = vmatprep.subr.bf16.mxu1 %v2602_v45  ;;  %2681 = vmatpush3.bf16.msra.mxu0 %v2678_v31 }
 0x4ed   :  { %2605 = vmatpush3.bf16.msra.mxu1 %v2602_v45 }
 0x4ee   :  { %2607 = vmatprep.subr.bf16.mxu1 %v2606_v48 }
 0x4f1   :  { %2609 = vmatpush3.bf16.msra.mxu1 %v2606_v48 }
 0x4f2   :  { %2611 = vmatprep.subr.bf16.mxu1 %v2610_v51 }
 0x4f5   :  { %2613 = vmatpush3.bf16.msra.mxu1 %v2610_v51 }
 0x4f6   :  { %2615 = vmatprep.subr.bf16.mxu1 %v2614_v54 }
 0x4f9   :  { %2617 = vmatpush3.bf16.msra.mxu1 %v2614_v54 }
 0x4fa   :  { %2619 = vmatprep.subr.bf16.mxu1 %v2618_v57 }
 0x4fc   :  { %2281 = vmatmul.mubr.f32.vlgmr.msra.gmra.mrb[12].mxu1 %v1274_v61 }
 0x4fd   :  { %2283 = vmatprep.mubr.f32.mxu1 %v1275_v0  ;;  %2621 = vmatpush3.bf16.msra.mxu1 %v2618_v57 }
 0x4fe   :  { %2623 = vmatprep.subr.bf16.mxu1 %v2622_v60 }
 0x500   :  { %2284 = vmatmul.mubr.f32.gmra.mrb[14].mxu1 %v1276_v2 }
 0x501   :  { %2625 = vmatpush3.bf16.msra.mxu1 %v2622_v60  ;;  %2318 = vmatprep.mubr.f32.mxu1 %v1274_v61 }
 0x502   :  { %2627 = vmatprep.subr.bf16.mxu1 %v2626_v1 }
 0x505   :  { %2629 = vmatpush3.bf16.msra.mxu1 %v2626_v1 }
 0x506   :  { %2631 = vmatprep.subr.bf16.mxu1 %v2630_v5 }
 0x509   :  { %2633 = vmatpush3.bf16.msra.mxu1 %v2630_v5 }
 0x50a   :  { %2635 = vmatprep.subr.bf16.mxu1 %v2634_v8 }
 0x50d   :  { %2637 = vmatpush3.bf16.msra.mxu1 %v2634_v8 }
 0x50e   :  { %2639 = vmatprep.subr.bf16.mxu1 %v2638_v11 }
 0x511   :  { %2641 = vmatpush3.bf16.msra.mxu1 %v2638_v11 }
 0x512   :  { %2643 = vmatprep.subr.bf16.mxu1 %v2642_v14 }
 0x515   :  { %2645 = vmatpush3.bf16.msra.mxu1 %v2642_v14 }
 0x516   :  { %2647 = vmatprep.subr.bf16.mxu1 %v2646_v17 }
 0x519   :  { %2649 = vmatpush3.bf16.msra.mxu1 %v2646_v17 }
 0x51c   :  { %2319 = vmatmul.mubr.f32.vlgmr.msra.gmra.mrb[12].mxu1 %v1452_v18 }
 0x51d   :  { %2321 = vmatprep.mubr.f32.mxu1 %v1276_v2 }
 0x520   :  { %2322 = vmatmul.mubr.f32.gmra.mrb[14].mxu1 %v1454_v19 }
 0x5ef   :  { %v2320_v33 = vpop.f32.mrb[12].mxu1 }
 0x5f0   :  { %v1551_v34 = vadd.f32 %v2320_v33, %v1728_v32  ;;  %v1521_v35 = vpop.f32.mrb[13].mxu1 }
 0x5f1   :  { %v1550_v36 = vadd.f32 %v1728_v32, %v1521_v35 }
 0x5f2   :  { %vm1555_vm15 = vcmp.gt.f32.partialorder %v1551_v34, 0.0  ;;  %v1559_v37 = vmul.f32 0.2, %v1551_v34 }
 0x5f3   :  { %vm1554_vm0 = vcmp.gt.f32.partialorder %v1550_v36, 0.0  ;;  %v1558_v38 = vmul.f32 0.2, %v1550_v36  ;;  %v2323_v39 = vpop.f32.mrb[14].mxu1 }
 0x5f4   :  { %v1563_v40 = vsel %vm1555_vm15, %v1551_v34, %v1559_v37  ;;  %v1553_v41 = vadd.f32 %v2323_v39, %v1728_v32  ;;  %v1531_v42 = vpop.f32.mrb[15].mxu1 }
 0x5f5   :  { %1567 = vst [vmem:[#allocation2 + $0x10] sm:$0xff] %v1563_v40  ;;  %v1562_v43 = vsel %vm1554_vm0, %v1550_v36, %v1558_v38  ;;  %v1552_v44 = vadd.f32 %v1728_v32, %v1531_v42 }
 0x5f6   :  { %1566 = vst [vmem:[#allocation2 + $0x8] sm:$0xff] %v1562_v43  ;;  %vm1557_vm1 = vcmp.gt.f32.partialorder %v1553_v41, 0.0  ;;  %v1561_v45 = vmul.f32 0.2, %v1553_v41  ;;  %2356 = vmatprep.mubr.f32.mxu0 %v1562_v43 }
 0x5f7   :  { %vm1556_vm2 = vcmp.gt.f32.partialorder %v1552_v44, 0.0  ;;  %v1560_v46 = vmul.f32 0.2, %v1552_v44  ;;  %2357 = vmatmul.mubr.f32.vlgmr.msra.gmra.mrb[12].mxu0 %v1563_v40 }
 0x5f8   :  { %v1565_v47 = vsel %vm1557_vm1, %v1553_v41, %v1561_v45 }
 0x5f9   :  { %1569 = vst [vmem:[#allocation2 + $0x30] sm:$0xff] %v1565_v47  ;;  %v1564_v48 = vsel %vm1556_vm2, %v1552_v44, %v1560_v46 }
 0x5fa   :  { %1568 = vst [vmem:[#allocation2 + $0x28] sm:$0xff] %v1564_v48  ;;  %2359 = vmatprep.mubr.f32.mxu0 %v1564_v48 }
 0x5fb   :  { %2360 = vmatmul.mubr.f32.gmra.mrb[14].mxu0 %v1565_v47 }
 0x6ca   :  { %v2358_v50 = vpop.f32.mrb[12].mxu0 }
 0x6cb   :  { %v1669_v51 = vadd.f32 %v2358_v50, %v1729_v49  ;;  %v1663_v52 = vpop.f32.mrb[13].mxu0 }
 0x6cc   :  { %v1664_v53 = vadd.f32 %v1729_v49, %v1663_v52 }
 0x6cd   :  { %1683 = vst [vmem:[#allocation8 + $0x8] sm:$0xff] %v1669_v51 }
 0x6ce   :  { %1682 = vst [vmem:[#allocation8] sm:$0xff] %v1664_v53  ;;  %v2361_v54 = vpop.f32.mrb[14].mxu0 }
 0x6cf   :  { %v1679_v55 = vadd.f32 %v2361_v54, %v1729_v49  ;;  %v1673_v56 = vpop.f32.mrb[15].mxu0 }
 0x6d0   :  { %v1674_v57 = vadd.f32 %v1729_v49, %v1673_v56 }
 0x6d1   :  { %1685 = vst [vmem:[#allocation8 + $0x18] sm:$0xff] %v1679_v55 }
 0x6d2   :  { %1684 = vst [vmem:[#allocation8 + $0x10] sm:$0xff] %v1674_v57 }
 0x6d3   :  { %2771 = shalt.err (!%p2768_p6)
}
 0x6d4   :  { %s2772_s3 = scalar_lea.hbm %s3001_s13, 512 }
 0x6d5   :  { %p2773_p7 = scmp.ne.s32.totalorder %s3001_s13, %s2772_s3  ;;  %p2776_p8 = scmp.lt.u32.totalorder %s2772_s3, %s3001_s13 }
 0x6d7   :  { %p2778_p9 = pnand %p2776_p8, %p2773_p7 }
 0x6d9   :  { %2781 = shalt.err (!%p2778_p9)
}
 0x6da   :  { %1697 = dma.vmem_to_hbm [thread:$0]  %s1692_s29, 512, %s3001_s13, [#allocation5], %s2789_s18, %s2789_s18, %s2790_s19  }
 0x6db   :  { %2786 = dma.done.wait [#allocation5], 512  }
 0x6dc   :  { %2787 = vsyncadd [#allocation5], 4294966784 }
 0x6dd   :  { %1701 = vsyncpa [#allocation4], 1 }
 0x6de   :  { %1702 = vsyncpa [#allocation7], 1 }
 0x6df   :  { %1703 = vsyncpa [#allocation5], 1 }

</bundles_post_ra>
